<compile_context>
chip_gen: v7x
topology: tpu7x:2x2x1
jax: 0.10.0
libtpu: 0.0.40
codegen_flags: <defaults>
</compile_context>

<pallas_src>
import functools

import jax
import jax.numpy as jnp
import numpy as np
from jax.experimental import pallas as pl
from jax.experimental.pallas import tpu as pltpu


def _mp_dist_kernel(ab_ref, x_ref, pool_ref, o_ref, *, wo, groups, split):
    """sigmoid(alpha*x + beta) followed by fused 2x2/s2 average pooling.

    ab_ref  : (2,) f32 SMEM = (alpha, beta)
    x_ref   : (tile_p, 4*groups*wo)   -- 2*groups input H-rows per flattened row
    pool_ref: (2*groups*wo, groups*wo) if split else (4*groups*wo, groups*wo)
    o_ref   : (tile_p, groups*wo)
    """
    alpha = ab_ref[0]
    beta = ab_ref[1]

    # Elementwise stage: VPU fma + EUP sigmoid, in f32 (v5e has no bf16 VPU/EUP).
    y = jax.nn.sigmoid(alpha * x_ref[...].astype(jnp.float32) + beta)

    if split:
        # Exact H-row-pair reduction as static lane-slice adds (halves the MXU
        # contraction vs the fused pool).  Only taken when 2*wo % 128 == 0, so every
        # slice boundary is vreg-aligned.
        row_w = 2 * wo
        chunks = [
            y[:, 2 * g * row_w: 2 * g * row_w + row_w]
            + y[:, 2 * g * row_w + row_w: 2 * (g + 1) * row_w]
            for g in range(groups)
        ]
        y = chunks[0] if groups == 1 else jnp.concatenate(chunks, axis=-1)

    # Column (and, on the non-split path, row) pairing as one MXU matmul against the
    # host-built 0/0.25 pooling matrix.  HIGHEST precision keeps f32 accuracy.
    out = jnp.dot(y, pool_ref[...],
                  precision=jax.lax.Precision.HIGHEST,
                  preferred_element_type=jnp.float32)
    o_ref[...] = out.astype(o_ref.dtype)


def _divisors(n):
    return [d for d in range(1, n + 1) if n % d == 0]


def _choose_group(c, ho, wo, lane_target=128):
    """Output rows folded per flattened row so the output is >= lane_target lanes wide.

    Candidates either divide Ho (row groups within a channel) or equal Ho * (divisor of
    C) (whole channels folded), so a plain contiguous reshape realizes the layout.
    """
    cands = set(_divisors(ho)) | {ho * d for d in _divisors(c)}
    good = sorted(g for g in cands if g * wo >= lane_target)
    return good[0] if good else max(cands)


def _choose_row_tile(p, lin, itemsize, sublane_mult, target_bytes=8 << 20, min_steps=8):
    """Rows per grid step: ~8 MiB of input per block, >= min_steps grid steps, divisor of P."""
    if p <= sublane_mult:
        return p
    cap = max(sublane_mult, target_bytes // (itemsize * lin))
    cap = min(cap, max(sublane_mult, -(-p // min_steps)))   # keep >= min_steps steps
    valid = []
    d = 1
    while d * d <= p:
        if p % d == 0:
            for cand in (d, p // d):
                if cand <= cap and cand % sublane_mult == 0:
                    valid.append(cand)
        d += 1
    if not valid:
        fallback = max(sublane_mult, (cap // sublane_mult) * sublane_mult)
        return min(p, fallback)            # ragged tail handled by Pallas store masking
    best = max(valid)
    # Prefer an even number of grid steps (megacore balance) if it costs <= 2x tile size.
    even = [cand for cand in valid if (p // cand) % 2 == 0 and 2 * cand >= best]
    return max(even) if even else best


def _build_pool(groups, wo, split):
    """Host-built (contraction, Lout) pooling matrix with entries 0 / 0.25."""
    rows_per_group = 2 * wo if split else 4 * wo
    lin = groups * rows_per_group
    lout = groups * wo
    r = np.arange(lin)
    o = np.arange(lout)
    r_group = r // rows_per_group
    r_col = r % (2 * wo)                   # column within one input H-row
    o_group = o // wo
    o_col = o % wo
    mask = (r_group[:, None] == o_group[None, :]) & ((r_col[:, None] // 2) == o_col[None, :])
    return jnp.asarray(np.where(mask, np.float32(0.25), np.float32(0.0)))


def mp_distance_any_score(dist, alpha, beta):
    """Pallas forward of MPdistance_any_score_func with AvgPool2d(kernel=2, stride=2).

    dist: (C, H, W) -> (C, H//2, W//2); alpha/beta: shape-(1,) parameters.
    """
    C, H, W = dist.shape
    Ho, Wo = H // 2, W // 2
    assert Ho >= 1 and Wo >= 1, "spatial dims must be >= 2 for 2x2/s2 pooling"

    # Floor-mode pooling (PyTorch AvgPool2d default) drops a trailing odd row/column.
    x = dist[:, : 2 * Ho, : 2 * Wo]

    # Lane-dense flattening (pure reshape of contiguous data -> free at XLA level).
    G = _choose_group(C, Ho, Wo)
    P = (C * Ho) // G                      # flattened rows
    Lin = 4 * G * Wo                       # input lanes per flattened row
    Lout = G * Wo                          # output lanes per flattened row
    x2 = x.reshape(P, Lin)

    # Split path: exact VPU row-pair adds + half-length MXU contraction; needs vreg
    # (128-lane) aligned H-row slices.  Narrow-W inputs use the fused (Lin, Lout) pool.
    split = (2 * Wo) % 128 == 0
    pool = _build_pool(G, Wo, split)
    # TODO(synk): for very wide inputs (Wo >~ 1024) the pool grows O(Wo^2); a second grid
    # axis tiling the lane dimension would be needed there.

    ab = jnp.stack([jnp.asarray(alpha, jnp.float32).reshape(()),
                    jnp.asarray(beta, jnp.float32).reshape(())])

    itemsize = jnp.dtype(dist.dtype).itemsize
    sublane_mult = {4: 8, 2: 16, 1: 32}.get(itemsize, 8)
    tile_p = _choose_row_tile(P, Lin, itemsize, sublane_mult)
    grid = (pl.cdiv(P, tile_p),)

    in_block = tile_p * Lin * itemsize
    out_block = tile_p * Lout * itemsize
    pool_bytes = int(pool.size) * 4
    vmem_limit = int(min(2 * (in_block + out_block + pool_bytes) + (8 << 20), 64 << 20))

    out2d = pl.pallas_call(
        functools.partial(_mp_dist_kernel, wo=Wo, groups=G, split=split),
        out_shape=jax.ShapeDtypeStruct((P, Lout), dist.dtype),
        grid=grid,
        in_specs=[
            pl.BlockSpec(memory_space=pltpu.MemorySpace.SMEM),      # (alpha, beta)
            pl.BlockSpec((tile_p, Lin), lambda i: (i, 0)),          # activations
            pl.BlockSpec(pool.shape, lambda i: (0, 0)),             # VMEM-resident pool
        ],
        out_specs=pl.BlockSpec((tile_p, Lout), lambda i: (i, 0)),
        compiler_params=pltpu.CompilerParams(
            dimension_semantics=("parallel",),
            vmem_limit_bytes=vmem_limit),
    )(ab, x2, pool)

    return out2d.reshape(C, Ho, Wo)


def _reference(dist, alpha, beta):
    """Pure-JAX reference of the PyTorch forward."""
    C, H, W = dist.shape
    Ho, Wo = H // 2, W // 2
    y = jax.nn.sigmoid(alpha.reshape(()) * dist + beta.reshape(()))
    y = y[:, : 2 * Ho, : 2 * Wo]
    return y.reshape(C, Ho, 2, Wo, 2).mean(axis=(2, 4))


if __name__ == "__main__":
    key = jax.random.PRNGKey(0)
    k1, k2, k3 = jax.random.split(key, 3)

    # 1) module-default small case (alpha=1, beta=0 as in __init__); narrow W exercises
    #    the fused-pool path with channel folding (Lout = 128 lanes, single grid step).
    C, H, W = 4, 16, 16
    dist = jax.random.normal(k1, (C, H, W), dtype=jnp.float32)
    alpha = jnp.ones((1,), jnp.float32)    # nn.Parameter(torch.ones(1))
    beta = jnp.zeros((1,), jnp.float32)    # nn.Parameter(torch.zeros(1))
    out = jax.block_until_ready(mp_distance_any_score(dist, alpha, beta))
    ref = _reference(dist, alpha, beta)
    assert out.shape == (C, H // 2, W // 2)
    assert jnp.allclose(out, ref, atol=1e-5, rtol=1e-5), float(jnp.max(jnp.abs(out - ref)))

    # 2) split path with two row-groups per flattened row (Wo=64), 8-step pipelined grid,
    #    non-default (loaded) parameter values.
    C2, H2, W2 = 16, 128, 128
    dist2 = jax.random.normal(k2, (C2, H2, W2), dtype=jnp.float32)
    alpha2 = jnp.full((1,), 1.7, jnp.float32)
    beta2 = jnp.full((1,), -0.3, jnp.float32)
    out2 = jax.block_until_ready(mp_distance_any_score(dist2, alpha2, beta2))
    ref2 = _reference(dist2, alpha2, beta2)
    assert out2.shape == (C2, H2 // 2, W2 // 2)
    assert jnp.allclose(out2, ref2, atol=1e-5, rtol=1e-5), float(jnp.max(jnp.abs(out2 - ref2)))

    # 3) split path, fully 128-lane-aligned (G=1, Wo=128), 8-step pipelined grid.
    C3, H3, W3 = 32, 256, 256
    dist3 = jax.random.normal(k3, (C3, H3, W3), dtype=jnp.float32)
    alpha3 = jnp.full((1,), 0.9, jnp.float32)
    beta3 = jnp.full((1,), 0.2, jnp.float32)
    out3 = jax.block_until_ready(mp_distance_any_score(dist3, alpha3, beta3))
    ref3 = _reference(dist3, alpha3, beta3)
    assert out3.shape == (C3, H3 // 2, W3 // 2)
    assert jnp.allclose(out3, ref3, atol=1e-5, rtol=1e-5), float(jnp.max(jnp.abs(out3 - ref3)))

    print("KERNEL_OK")
</pallas_src>

<mosaic_0001>
module attributes {stable_mosaic.version = 11 : i64} {
  func.func @_mp_dist_kernel(%arg0: i32, %arg1: memref<2xf32, #tpu.memory_space<smem>>, %arg2: memref<2x512xf32, #tpu.memory_space<vmem>>, %arg3: memref<512x128xf32, #tpu.memory_space<vmem>>, %arg4: memref<2x128xf32, #tpu.memory_space<vmem>>) attributes {dimension_semantics = [#tpu.dimension_semantics<parallel>], iteration_bounds = array<i64: 1>, scalar_prefetch = 0 : i64, scratch_operands = 0 : i64, tpu.core_type = #tpu.core_type<tc>, window_params = [{transform_indices = @transform_0, window_bounds = array<i64: 2>}, {transform_indices = @transform_1, window_bounds = array<i64: 2, 512>}, {pipeline_mode = #tpu.pipeline_mode<synchronous>, transform_indices = @transform_2, window_bounds = array<i64: 512, 128>}, {transform_indices = @transform_3, window_bounds = array<i64: 2, 128>}]} {
    %c0 = arith.constant 0 : index
    %0 = memref.load %arg1[%c0] : memref<2xf32, #tpu.memory_space<smem>>
    %c1 = arith.constant 1 : index
    %1 = memref.load %arg1[%c1] : memref<2xf32, #tpu.memory_space<smem>>
    %c0_0 = arith.constant 0 : index
    %c0_1 = arith.constant 0 : index
    %2 = vector.load %arg2[%c0_0, %c0_1] : memref<2x512xf32, #tpu.memory_space<vmem>>, vector<2x512xf32>
    %3 = vector.broadcast %0 : f32 to vector<2x512xf32>
    %4 = arith.mulf %3, %2 : vector<2x512xf32>
    %5 = vector.broadcast %1 : f32 to vector<2x512xf32>
    %6 = arith.addf %4, %5 : vector<2x512xf32>
    %7 = arith.negf %6 : vector<2x512xf32>
    %8 = math.exp %7 : vector<2x512xf32>
    %cst = arith.constant 1.000000e+00 : f32
    %9 = vector.broadcast %cst : f32 to vector<2x512xf32>
    %10 = arith.addf %9, %8 : vector<2x512xf32>
    %11 = arith.divf %9, %10 : vector<2x512xf32>
    %c0_2 = arith.constant 0 : index
    %c0_3 = arith.constant 0 : index
    %12 = vector.load %arg3[%c0_2, %c0_3] : memref<512x128xf32, #tpu.memory_space<vmem>>, vector<512x128xf32>
    %cst_4 = arith.constant dense<0.000000e+00> : vector<2x128xf32>
    %13 = tpu.matmul %11, %12, %cst_4 {dimension_numbers = #tpu.dot_dimension_numbers<[1], [0], [0], [1], [0, 0, 1, 1], [], []>, precision = #tpu.contract_precision<fp32>} : vector<2x512xf32>, vector<512x128xf32>, vector<2x128xf32> -> vector<2x128xf32>
    %c0_5 = arith.constant 0 : index
    %c0_6 = arith.constant 0 : index
    %14 = vector.load %arg4[%c0_5, %c0_6] : memref<2x128xf32, #tpu.memory_space<vmem>>, vector<2x128xf32>
    tpu.vector_store %arg4[%c0_5, %c0_6], %13 {strides = array<i32>} : memref<2x128xf32, #tpu.memory_space<vmem>>, vector<2x128xf32>,
    return
  }
  func.func @transform_0(%arg0: i32) -> i32 {
    %c0_i32 = arith.constant 0 : i32
    %c0_i32_0 = arith.constant 0 : i32
    return %c0_i32 : i32
  }
  func.func @transform_1(%arg0: i32) -> (i32, i32) {
    %c0_i32 = arith.constant 0 : i32
    %c0_i32_0 = arith.constant 0 : i32
    return %arg0, %c0_i32 : i32, i32
  }
  func.func @transform_2(%arg0: i32) -> (i32, i32) {
    %c0_i32 = arith.constant 0 : i32
    %c0_i32_0 = arith.constant 0 : i32
    %c0_i32_1 = arith.constant 0 : i32
    return %c0_i32, %c0_i32_0 : i32, i32
  }
  func.func @transform_3(%arg0: i32) -> (i32, i32) {
    %c0_i32 = arith.constant 0 : i32
    %c0_i32_0 = arith.constant 0 : i32
    return %arg0, %c0_i32 : i32, i32
  }
}

</mosaic_0001>

<bundles_post_ra>
// kernel: tpu_custom_call.1
= control target key start
LH: loop header
LB: loop body
LE: loop exit
PB: predicated region body
PF: predicated region fallthrough
CT: control target
= control target key end

     0   :  { %8 = vsyncpa [#allocation5], 0  ;;  %s4058_s0 = inlined_call_operand.hbm [shape: f32[2], index: 0, kind: input, shape index: {}]   ;;  %s4059_s1 = inlined_call_operand.hbm [shape: f32[2,512], index: 1, kind: input, shape index: {}]   ;;  %s4060_s2 = inlined_call_operand.hbm [shape: f32[512,128], index: 2, kind: input, shape index: {}]   ;;  %s4061_s3 = inlined_call_operand.hbm [shape: f32[2,128], index: 3, kind: output, shape index: {}]  }
   0x1   :  { %9 = vsyncpa [#allocation3], 0 }
   0x2   :  { %10 = vsyncpa [#allocation8], 0 }
   0x3   :  { %11 = vsyncpa [#allocation4], 0  ;;  %s2710_s14 = scalar_lea.hbm %s4058_s0, 16 }
   0x4   :  { %p2711_p0 = scmp.ne.s32.totalorder %s4058_s0, %s2710_s14  ;;  %p2714_p1 = scmp.lt.u32.totalorder %s2710_s14, %s4058_s0 }
   0x6   :  { %p2716_p2 = pnand %p2714_p1, %p2711_p0 }
   0x8   :  { %2719 = shalt.err (!%p2716_p2)
}
   0x9   :  { %s2794_s19 = smov [#allocation2]   ;;  %s2795_s22 = smov [#allocation6]  }
   0xa   :  { %19 = dma.hbm_to_smem %s4058_s0, 16, %s2794_s19, [#allocation5]  }
   0xb   :  { %s26_s23 = sshll.u32 %s2795_s22, 4  ;;  %s2796_s24 = smov [#allocation7]   ;;  %s27_s23 = int_to_ptr.vmem [resolvable:$true] %s26_s23 }
   0xc   :  { %s35_s25 = sshll.u32 %s2796_s24, 4  ;;  %s2720_s28 = scalar_lea.hbm %s4059_s1, 128  ;;  %s36_s25 = int_to_ptr.vmem [resolvable:$true] %s35_s25 }
   0xd   :  { %p2721_p3 = scmp.ne.s32.totalorder %s4059_s1, %s2720_s28  ;;  %p2724_p4 = scmp.lt.u32.totalorder %s2720_s28, %s4059_s1 }
   0xf   :  { %p2726_p5 = pnand %p2724_p4, %p2721_p3 }
  0x11   :  { %2729 = shalt.err (!%p2726_p5)
}
  0x12   :  { %s2730_s0 = scalar_lea.vmem %s27_s23, 128  ;;  %p2735_p7 = scmp.lt.s32.totalorder %s27_s23, %s27_s23 }
  0x13   :  { %p2731_p6 = scmp.ne.s32.totalorder %s27_s23, %s2730_s0  ;;  %p2736_p8 = scmp.lt.s32.totalorder %s2730_s0, %s2730_s0 }
  0x15   :  { %p2737_p9 = por %p2736_p8, %p2735_p7 }
  0x17   :  { %p2738_p10 = pnand %p2737_p9, %p2731_p6 }
  0x19   :  { %2741 = shalt.err (!%p2738_p10)
}
  0x1a   :  { %29 = dma.hbm_to_vmem [thread:$0]  %s4059_s1, 128, %s27_s23, [#allocation3]  }
  0x1b   :  { %s2742_s10 = scalar_lea.hbm %s4060_s2, 8192 }
  0x1c   :  { %p2743_p11 = scmp.ne.s32.totalorder %s4060_s2, %s2742_s10  ;;  %p2746_p12 = scmp.lt.u32.totalorder %s2742_s10, %s4060_s2 }
  0x1e   :  { %p2748_p13 = pnand %p2746_p12, %p2743_p11 }
  0x20   :  { %2751 = shalt.err (!%p2748_p13)
}
  0x21   :  { %s2752_s15 = scalar_lea.vmem %s36_s25, 8192  ;;  %p2757_p1 = scmp.lt.s32.totalorder %s36_s25, %s36_s25 }
  0x22   :  { %p2753_p0 = scmp.ne.s32.totalorder %s36_s25, %s2752_s15  ;;  %p2758_p2 = scmp.lt.s32.totalorder %s2752_s15, %s2752_s15 }
  0x24   :  { %p2759_p3 = por %p2758_p2, %p2757_p1 }
  0x26   :  { %p2760_p4 = pnand %p2759_p3, %p2753_p0 }
  0x28   :  { %2763 = shalt.err (!%p2760_p4)
}
  0x29   :  { %s2797_s1 = smov 128   ;;  %s2798_s16 = smov 8  }
  0x2a   :  { %41 = dma.hbm_to_vmem [thread:$0]  %s4060_s2, 8192, %s36_s25, [#allocation8], %s2797_s1, %s2797_s1, %s2798_s16  }
  0x2b   :  { %2786 = dma.done.wait [#allocation5], 16  }
  0x2c   :  { %2787 = vsyncadd [#allocation5], 4294967280 }
  0x2d   :  { %2788 = dma.done.wait [#allocation3], 128  }
  0x2e   :  { %2789 = vsyncadd [#allocation3], 4294967168 }
  0x2f   :  { %2790 = dma.done.wait [#allocation8], 8192  }
  0x30   :  { %2791 = vsyncadd [#allocation8], 4294959104 }
  0x31   :  { %51 = sfence }
  0x32   :  { %v81_v0 = vld [vmem:[#allocation7 + $0x80] sm:$0xff]  ;;  %v82_v1 = vld [vmem:[#allocation7 + $0x88] sm:$0xff]  ;;  %v83_v7 = vld [vmem:[#allocation7 + $0x90] sm:$0xff]  ;;  %s3043_s2 = sld [smem:[#allocation2]]  ;;  %s3048_s19 = sld [smem:[#allocation2 + $0x1]] }
  0x33   :  { %v65_v2 = vld [vmem:[#allocation7] sm:$0xff]  ;;  %v200_v3 = vand.u32 4294901760, %v81_v0  ;;  %v203_v4 = vand.u32 4294901760, %v82_v1  ;;  %v66_v5 = vld [vmem:[#allocation7 + $0x8] sm:$0xff]  ;;  %v84_v8 = vld [vmem:[#allocation7 + $0x98] sm:$0xff]  ;;  %v206_v10 = vand.u32 4294901760, %v83_v7 }
  0x34   :  { %v152_v6 = vand.u32 4294901760, %v65_v2  ;;  %v155_v9 = vand.u32 4294901760, %v66_v5  ;;  %v209_v11 = vand.u32 4294901760, %v84_v8  ;;  %v67_v16 = vld [vmem:[#allocation7 + $0x10] sm:$0xff]  ;;  %v68_v17 = vld [vmem:[#allocation7 + $0x18] sm:$0xff]  ;;  %v85_v38 = vld [vmem:[#allocation7 + $0xa0] sm:$0xff] }
  0x35   :  { %v2857_v12 = vpack.c.bf16 %v203_v4, %v200_v3  ;;  %v2861_v14 = vsub.f32 %v81_v0, %v200_v3  ;;  %v2863_v15 = vsub.f32 %v82_v1, %v203_v4  ;;  %v2871_v21 = vsub.f32 %v83_v7, %v206_v10  ;;  %v86_v39 = vld [vmem:[#allocation7 + $0xa8] sm:$0xff]  ;;  %v69_v48 = vld [vmem:[#allocation7 + $0x20] sm:$0xff]  ;;  %v87_v58 = vld [vmem:[#allocation7 + $0xb0] sm:$0xff]  ;;  %s2800_s20 = smov [#allocation9]  }
  0x36   :  { %v2859_v13 = vsub.f32 %v65_v2, %v152_v6  ;;  %v2865_v18 = vpack.c.bf16 %v155_v9, %v152_v6  ;;  %v2867_v19 = vsub.f32 %v66_v5, %v155_v9  ;;  %v2869_v20 = vpack.c.bf16 %v209_v11, %v206_v10  ;;  %v70_v53 = vld [vmem:[#allocation7 + $0x28] sm:$0xff]  ;;  %v88_v63 = vld [vmem:[#allocation7 + $0xb8] sm:$0xff]  ;;  %s1882_s21 = sshll.u32 %s2800_s20, 4  ;;  %s1883_s21 = int_to_ptr.vmem [resolvable:$true] %s1882_s21 }
  0x37   :  { %2316 = vmatprep.subr.bf16.mxu0 %v2857_v12  ;;  %v4088_v22 = vand.u32 4294901760, %v2861_v14  ;;  %v4087_v23 = vand.u32 4294901760, %v2863_v15  ;;  %v2877_v25 = vsub.f32 %v84_v8, %v209_v11  ;;  %v158_v27 = vand.u32 4294901760, %v67_v16  ;;  %v71_v8 = vld [vmem:[#allocation7 + $0x30] sm:$0xff]  ;;  %s2764_s22 = scalar_lea.vmem %s1883_s21, 32  ;;  %p2769_p6 = scmp.lt.s32.totalorder %s1883_s21, %s1883_s21 }
  0x38   :  { %v4085_v24 = vand.u32 4294901760, %v2859_v13  ;;  %2318 = vmatpush3.bf16.msra.mxu0 %v2865_v18  ;;  %v4082_v26 = vand.u32 4294901760, %v2867_v19  ;;  %v161_v28 = vand.u32 4294901760, %v68_v17  ;;  %v4081_v29 = vand.u32 4294901760, %v2871_v21  ;;  %p2765_p5 = scmp.ne.s32.totalorder %s1883_s21, %s2764_s22  ;;  %p2770_p7 = scmp.lt.s32.totalorder %s2764_s22, %s2764_s22 }
  0x39   :  { %v379_v30 = vsub.f32 %v2861_v14, %v4088_v22  ;;  %v386_v31 = vsub.f32 %v2863_v15, %v4087_v23  ;;  %2320 = vmatprep.subr.bf16.mxu0 %v2869_v20  ;;  %v4079_v33 = vand.u32 4294901760, %v2877_v25  ;;  %v2898_v36 = vsub.f32 %v67_v16, %v158_v27  ;;  %v54_v23 = vld [vmem:[#allocation6] sm:$0xff] }
  0x3a   :  { %v267_v32 = vsub.f32 %v2859_v13, %v4085_v24  ;;  %v274_v34 = vsub.f32 %v2867_v19, %v4082_v26  ;;  %v2896_v35 = vpack.c.bf16 %v161_v28, %v158_v27  ;;  %v2900_v37 = vsub.f32 %v68_v17, %v161_v28  ;;  %v72_v17 = vld [vmem:[#allocation7 + $0x38] sm:$0xff]  ;;  %p2771_p8 = por %p2770_p7, %p2769_p6 }
  0x3b   :  { %v380_v40 = vand.u32 4294901760, %v379_v30  ;;  %v387_v41 = vand.u32 4294901760, %v386_v31  ;;  %v393_v43 = vsub.f32 %v2871_v21, %v4081_v29  ;;  %v400_v45 = vsub.f32 %v2877_v25, %v4079_v33 }
  0x3c   :  { %v268_v42 = vand.u32 4294901760, %v267_v32  ;;  %v275_v44 = vand.u32 4294901760, %v274_v34  ;;  %2322 = vmatpush3.bf16.msra.mxu0 %v2896_v35  ;;  %v4077_v46 = vand.u32 4294901760, %v2898_v36  ;;  %v4076_v47 = vand.u32 4294901760, %v2900_v37  ;;  %p2772_p9 = pnand %p2771_p8, %p2765_p5 }
  0x3d   :  { %v2347_v49 = vpack.c.bf16 %v387_v41, %v380_v40  ;;  %v394_v50 = vand.u32 4294901760, %v393_v43  ;;  %v212_v51 = vand.u32 4294901760, %v85_v38  ;;  %v215_v52 = vand.u32 4294901760, %v86_v39 }
  0x3e   :  { %v2349_v54 = vpack.c.bf16 %v275_v44, %v268_v42  ;;  %v401_v55 = vand.u32 4294901760, %v400_v45  ;;  %v281_v56 = vsub.f32 %v2898_v36, %v4077_v46  ;;  %v288_v57 = vsub.f32 %v2900_v37, %v4076_v47 }
  0x3f   :  { %2348 = vmatprep.subr.bf16.mxu1 %v2347_v49  ;;  %v2917_v59 = vpack.c.bf16 %v215_v52, %v212_v51  ;;  %v2919_v60 = vsub.f32 %v85_v38, %v212_v51  ;;  %v2921_v61 = vsub.f32 %v86_v39, %v215_v52  ;;  %v164_v62 = vand.u32 4294901760, %v69_v48  ;;  %v90_v51 = vld [vmem:[#allocation7 + $0xc8] sm:$0xff]  ;;  %v73_v52 = vld [vmem:[#allocation7 + $0x40] sm:$0xff] }
  0x40   :  { %2350 = vmatpush3.bf16.msra.mxu1 %v2349_v54  ;;  %v2351_v0 = vpack.c.bf16 %v401_v55, %v394_v50  ;;  %v282_v1 = vand.u32 4294901760, %v281_v56  ;;  %v289_v2 = vand.u32 4294901760, %v288_v57  ;;  %v167_v3 = vand.u32 4294901760, %v70_v53  ;;  %v89_v50 = vld [vmem:[#allocation7 + $0xc0] sm:$0xff] }
  0x41   :  { %2324 = vmatprep.subr.bf16.mxu0 %v2917_v59  ;;  %v2924_v4 = vsub.f32 %v69_v48, %v164_v62  ;;  %v4073_v5 = vand.u32 4294901760, %v2919_v60  ;;  %v4072_v6 = vand.u32 4294901760, %v2921_v61  ;;  %v218_v7 = vand.u32 4294901760, %v87_v58 }
  0x42   :  { %2352 = vmatprep.subr.bf16.mxu1 %v2351_v0  ;;  %v2353_v9 = vpack.c.bf16 %v289_v2, %v282_v1  ;;  %v2928_v10 = vpack.c.bf16 %v167_v3, %v164_v62  ;;  %v2930_v11 = vsub.f32 %v70_v53, %v167_v3  ;;  %v221_v16 = vand.u32 4294901760, %v88_v63  ;;  %v74_v3 = vld [vmem:[#allocation7 + $0x48] sm:$0xff] }
  0x43   :  { %v407_v27 = vsub.f32 %v2919_v60, %v4073_v5  ;;  %v414_v28 = vsub.f32 %v2921_v61, %v4072_v6  ;;  %v4071_v30 = vand.u32 4294901760, %v2924_v4  ;;  %v2939_v31 = vsub.f32 %v87_v58, %v218_v7 }
  0x44   :  { %2354 = vmatpush3.bf16.msra.mxu1 %v2353_v9  ;;  %2326 = vmatpush3.bf16.msra.mxu0 %v2928_v10  ;;  %v4070_v32 = vand.u32 4294901760, %v2930_v11  ;;  %v2943_v34 = vpack.c.bf16 %v221_v16, %v218_v7  ;;  %v2945_v38 = vsub.f32 %v88_v63, %v221_v16  ;;  %v170_v39 = vand.u32 4294901760, %v71_v8 }
  0x45   :  { %v408_v40 = vand.u32 4294901760, %v407_v27  ;;  %v415_v41 = vand.u32 4294901760, %v414_v28  ;;  %v295_v42 = vsub.f32 %v2924_v4, %v4071_v30  ;;  %v173_v43 = vand.u32 4294901760, %v72_v17  ;;  %v91_v27 = vld [vmem:[#allocation7 + $0xd0] sm:$0xff] }
  0x46   :  { %4146 = vst [vmem:[#allocation14_spill] sm:$0xff] %v2943_v34  ;;  %v302_v44 = vsub.f32 %v2930_v11, %v4070_v32  ;;  %2328 = vmatprep.subr.bf16.mxu0 %v2943_v34  ;;  %v2954_v45 = vsub.f32 %v71_v8, %v170_v39  ;;  %v4068_v48 = vand.u32 4294901760, %v2939_v31  ;;  %v4066_v49 = vand.u32 4294901760, %v2945_v38 }
  0x47   :  { %v2355_v53 = vpack.c.bf16 %v415_v41, %v408_v40  ;;  %v296_v54 = vand.u32 4294901760, %v295_v42  ;;  %v2958_v55 = vpack.c.bf16 %v173_v43, %v170_v39  ;;  %v2960_v56 = vsub.f32 %v72_v17, %v173_v43  ;;  %v92_v42 = vld [vmem:[#allocation7 + $0xd8] sm:$0xff] }
  0x48   :  { %v303_v57 = vand.u32 4294901760, %v302_v44  ;;  %v421_v58 = vsub.f32 %v2939_v31, %v4068_v48  ;;  %v428_v62 = vsub.f32 %v2945_v38, %v4066_v49  ;;  %v4064_v63 = vand.u32 4294901760, %v2954_v45  ;;  %v94_v48 = vld [vmem:[#allocation7 + $0xe8] sm:$0xff] }
  0x49   :  { %4147 = vst [vmem:[#allocation15_spill] sm:$0xff] %v2958_v55  ;;  %2356 = vmatprep.subr.bf16.mxu1 %v2355_v53  ;;  %2330 = vmatpush3.bf16.msra.mxu0 %v2958_v55  ;;  %v4062_v0 = vand.u32 4294901760, %v2960_v56  ;;  %v224_v1 = vand.u32 4294901760, %v89_v50  ;;  %v227_v2 = vand.u32 4294901760, %v90_v51  ;;  %v176_v7 = vand.u32 4294901760, %v73_v52 }
  0x4a   :  { %v2357_v8 = vpack.c.bf16 %v303_v57, %v296_v54  ;;  %v422_v9 = vand.u32 4294901760, %v421_v58  ;;  %v429_v16 = vand.u32 4294901760, %v428_v62  ;;  %v309_v17 = vsub.f32 %v2954_v45, %v4064_v63 }
  0x4b   :  { %v316_v28 = vsub.f32 %v2960_v56, %v4062_v0  ;;  %v2977_v39 = vpack.c.bf16 %v227_v2, %v224_v1  ;;  %v2979_v40 = vsub.f32 %v89_v50, %v224_v1  ;;  %v2981_v41 = vsub.f32 %v90_v51, %v227_v2 }
  0x4c   :  { %2358 = vmatpush3.bf16.msra.mxu1 %v2357_v8  ;;  %v2359_v43 = vpack.c.bf16 %v429_v16, %v422_v9  ;;  %v310_v44 = vand.u32 4294901760, %v309_v17  ;;  %v179_v53 = vand.u32 4294901760, %v74_v3  ;;  %v2983_v54 = vsub.f32 %v73_v52, %v176_v7  ;;  %v75_v8 = vld [vmem:[#allocation7 + $0x50] sm:$0xff]  ;;  %v76_v9 = vld [vmem:[#allocation7 + $0x58] sm:$0xff] }
  0x4d   :  { %4148 = vst [vmem:[#allocation16_spill] sm:$0xff] %v2977_v39  ;;  %v317_v57 = vand.u32 4294901760, %v316_v28  ;;  %2332 = vmatprep.subr.bf16.mxu0 %v2977_v39  ;;  %v4063_v58 = vand.u32 4294901760, %v2979_v40  ;;  %v4065_v62 = vand.u32 4294901760, %v2981_v41  ;;  %v230_v0 = vand.u32 4294901760, %v91_v27 }
  0x4e   :  { %2360 = vmatprep.subr.bf16.mxu1 %v2359_v43  ;;  %v2988_v50 = vpack.c.bf16 %v179_v53, %v176_v7  ;;  %v2990_v51 = vsub.f32 %v74_v3, %v179_v53  ;;  %v4067_v1 = vand.u32 4294901760, %v2983_v54  ;;  %v233_v2 = vand.u32 4294901760, %v92_v42 }
  0x4f   :  { %v2361_v52 = vpack.c.bf16 %v317_v57, %v310_v44  ;;  %v435_v16 = vsub.f32 %v2979_v40, %v4063_v58  ;;  %v442_v17 = vsub.f32 %v2981_v41, %v4065_v62  ;;  %v2999_v28 = vsub.f32 %v91_v27, %v230_v0  ;;  %v93_v62 = vld [vmem:[#allocation7 + $0xe0] sm:$0xff] }
  0x50   :  { %4149 = vst [vmem:[#allocation17_spill] sm:$0xff] %v2988_v50  ;;  %2334 = vmatpush3.bf16.msra.mxu0 %v2988_v50  ;;  %v323_v3 = vsub.f32 %v2983_v54, %v4067_v1  ;;  %v4069_v7 = vand.u32 4294901760, %v2990_v51  ;;  %v3006_v43 = vpack.c.bf16 %v233_v2, %v230_v0  ;;  %v3008_v44 = vsub.f32 %v92_v42, %v233_v2  ;;  %v77_v42 = vld [vmem:[#allocation7 + $0x60] sm:$0xff] }
  0x51   :  { %2362 = vmatpush3.bf16.msra.mxu1 %v2361_v52  ;;  %v436_v53 = vand.u32 4294901760, %v435_v16  ;;  %v443_v57 = vand.u32 4294901760, %v442_v17  ;;  %v182_v58 = vand.u32 4294901760, %v75_v8  ;;  %v185_v63 = vand.u32 4294901760, %v76_v9 }
  0x52   :  { %4150 = vst [vmem:[#allocation18_spill] sm:$0xff] %v3006_v43  ;;  %v324_v27 = vand.u32 4294901760, %v323_v3  ;;  %v330_v49 = vsub.f32 %v2990_v51, %v4069_v7  ;;  %2336 = vmatprep.subr.bf16.mxu0 %v3006_v43  ;;  %v4074_v1 = vand.u32 4294901760, %v2999_v28  ;;  %v4075_v0 = vand.u32 4294901760, %v3008_v44 }
  0x53   :  { %v2363_v2 = vpack.c.bf16 %v443_v57, %v436_v53  ;;  %v3016_v52 = vpack.c.bf16 %v185_v63, %v182_v58  ;;  %v3018_v16 = vsub.f32 %v75_v8, %v182_v58  ;;  %v3020_v17 = vsub.f32 %v76_v9, %v185_v63  ;;  %v78_v63 = vld [vmem:[#allocation7 + $0x68] sm:$0xff] }
  0x54   :  { %v331_v3 = vand.u32 4294901760, %v330_v49  ;;  %v449_v7 = vsub.f32 %v2999_v28, %v4074_v1  ;;  %v456_v32 = vsub.f32 %v3008_v44, %v4075_v0  ;;  %v236_v30 = vand.u32 4294901760, %v93_v62  ;;  %v95_v1 = vld [vmem:[#allocation7 + $0xf0] sm:$0xff] }
  0x55   :  { %4151 = vst [vmem:[#allocation19_spill] sm:$0xff] %v3016_v52  ;;  %2364 = vmatprep.subr.bf16.mxu1 %v2363_v2  ;;  %2338 = vmatpush3.bf16.msra.mxu0 %v3016_v52  ;;  %v4078_v53 = vand.u32 4294901760, %v3018_v16  ;;  %v4080_v58 = vand.u32 4294901760, %v3020_v17  ;;  %v239_v8 = vand.u32 4294901760, %v94_v48  ;;  %v188_v9 = vand.u32 4294901760, %v77_v42 }
  0x56   :  { %v2365_v49 = vpack.c.bf16 %v331_v3, %v324_v27  ;;  %v450_v57 = vand.u32 4294901760, %v449_v7  ;;  %v457_v6 = vand.u32 4294901760, %v456_v32  ;;  %v3031_v5 = vsub.f32 %v93_v62, %v236_v30  ;;  %v96_v3 = vld [vmem:[#allocation7 + $0xf8] sm:$0xff] }
  0x57   :  { %v337_v0 = vsub.f32 %v3018_v16, %v4078_v53  ;;  %v344_v2 = vsub.f32 %v3020_v17, %v4080_v58  ;;  %v3039_v47 = vpack.c.bf16 %v239_v8, %v236_v30  ;;  %v3041_v46 = vsub.f32 %v94_v48, %v239_v8  ;;  %v79_v8 = vld [vmem:[#allocation7 + $0x70] sm:$0xff] }
  0x58   :  { %2366 = vmatpush3.bf16.msra.mxu1 %v2365_v49  ;;  %v2367_v7 = vpack.c.bf16 %v457_v6, %v450_v57  ;;  %v191_v32 = vand.u32 4294901760, %v78_v63  ;;  %v3045_v62 = vsub.f32 %v77_v42, %v188_v9  ;;  %v4083_v27 = vand.u32 4294901760, %v3031_v5  ;;  %v80_v57 = vld [vmem:[#allocation7 + $0x78] sm:$0xff] }
  0x59   :  { %4152 = vst [vmem:[#allocation20_spill] sm:$0xff] %v3039_v47  ;;  %v338_v53 = vand.u32 4294901760, %v337_v0  ;;  %v345_v33 = vand.u32 4294901760, %v344_v2  ;;  %2340 = vmatprep.subr.bf16.mxu0 %v3039_v47  ;;  %v4084_v30 = vand.u32 4294901760, %v3041_v46  ;;  %v242_v48 = vand.u32 4294901760, %v95_v1 }
  0x5a   :  { %2368 = vmatprep.subr.bf16.mxu1 %v2367_v7  ;;  %v3052_v58 = vpack.c.bf16 %v191_v32, %v188_v9  ;;  %v3054_v6 = vsub.f32 %v78_v63, %v191_v32  ;;  %v463_v42 = vsub.f32 %v3031_v5, %v4083_v27  ;;  %v4086_v49 = vand.u32 4294901760, %v3045_v62 }
  0x5b   :  { %v2369_v0 = vpack.c.bf16 %v345_v33, %v338_v53  ;;  %v470_v2 = vsub.f32 %v3041_v46, %v4084_v30  ;;  %v245_v29 = vand.u32 4294901760, %v96_v3  ;;  %v3063_v26 = vsub.f32 %v95_v1, %v242_v48 }
  0x5c   :  { %4153 = vst [vmem:[#allocation21_spill] sm:$0xff] %v3052_v58  ;;  %2342 = vmatpush3.bf16.msra.mxu0 %v3052_v58  ;;  %v464_v9 = vand.u32 4294901760, %v463_v42  ;;  %v351_v63 = vsub.f32 %v3045_v62, %v4086_v49  ;;  %v4089_v7 = vand.u32 4294901760, %v3054_v6  ;;  %v194_v32 = vand.u32 4294901760, %v79_v8 }
  0x5d   :  { %2370 = vmatpush3.bf16.msra.mxu1 %v2369_v0  ;;  %v471_v27 = vand.u32 4294901760, %v470_v2  ;;  %v3070_v33 = vpack.c.bf16 %v245_v29, %v242_v48  ;;  %v3072_v53 = vsub.f32 %v96_v3, %v245_v29  ;;  %v197_v30 = vand.u32 4294901760, %v80_v57 }
  0x5e   :  { %v352_v1 = vand.u32 4294901760, %v351_v63  ;;  %v358_v42 = vsub.f32 %v3054_v6, %v4089_v7  ;;  %v3077_v24 = vsub.f32 %v79_v8, %v194_v32  ;;  %v4094_v49 = vand.u32 4294901760, %v3063_v26 }
  0x5f   :  { %4154 = vst [vmem:[#allocation22_spill] sm:$0xff] %v3070_v33  ;;  %v2371_v22 = vpack.c.bf16 %v471_v27, %v464_v9  ;;  %2344 = vmatprep.subr.bf16.mxu0 %v3070_v33  ;;  %v3081_v48 = vpack.c.bf16 %v197_v30, %v194_v32  ;;  %v3083_v0 = vsub.f32 %v80_v57, %v197_v30  ;;  %v483_v29 = vand.u32 4294901760, %v3072_v53 }
  0x60   :  { %v359_v3 = vand.u32 4294901760, %v358_v42  ;;  %v477_v2 = vsub.f32 %v3063_v26, %v4094_v49  ;;  %v364_v8 = vand.u32 4294901760, %v3077_v24  ;;  %v55_v63 = vstv %s3043_s2 }
  0x61   :  { %4155 = vst [vmem:[#allocation23_spill] sm:$0xff] %v3081_v48  ;;  %2372 = vmatprep.subr.bf16.mxu1 %v2371_v22  ;;  %2346 = vmatpush3.bf16.msra.mxu0 %v3081_v48  ;;  %v484_v27 = vsub.f32 %v3072_v53, %v483_v29  ;;  %v371_v9 = vand.u32 4294901760, %v3083_v0  ;;  %v56_v32 = vmul.f32 %v55_v63, %v54_v23  ;;  %v57_v30 = vstv %s3048_s19 }
  0x62   :  { %v2373_v57 = vpack.c.bf16 %v359_v3, %v352_v1  ;;  %v478_v7 = vand.u32 4294901760, %v477_v2  ;;  %v365_v42 = vsub.f32 %v3077_v24, %v364_v8  ;;  %v2379_v22 = vpack.c.bf16 %v2863_v15, %v2861_v14 }
  0x63   :  { %v485_v33 = vand.u32 4294901760, %v484_v27  ;;  %v372_v58 = vsub.f32 %v3083_v0, %v371_v9  ;;  %v58_v49 = vadd.f32 %v57_v30, %v56_v32  ;;  %v4161_v30 = vand.u32 4294901760, %v2877_v25 }
  0x64   :  { %2374 = vmatpush3.bf16.msra.mxu1 %v2373_v57  ;;  %v366_v47 = vand.u32 4294901760, %v365_v42  ;;  %2380 = vmatprep.subr.bf16.mxu0 %v2379_v22  ;;  %v4156_v42 = vand.u32 4294901760, %v2861_v14  ;;  %v4157_v22 = vand.u32 4294901760, %v2863_v15  ;;  %v4163_v57 = vand.u32 4294901760, %v2898_v36 }
  0x65   :  { %v2375_v52 = vpack.c.bf16 %v485_v33, %v478_v7  ;;  %v373_v43 = vand.u32 4294901760, %v372_v58  ;;  %v1894_v23 = vmul.f32 -1.442695, %v58_v49  ;;  %v4164_v14 = vand.u32 4294901760, %v2900_v37 }
  0x66   :  { %v4166_v15 = vand.u32 4294901760, %v2919_v60 }
  0x67   :  { %2376 = vmatprep.subr.bf16.mxu1 %v2375_v52  ;;  %v2377_v27 = vpack.c.bf16 %v373_v43, %v366_v47  ;;  %2706 = vpow2.f32 %v1894_v23  ;;  %v3134_v23 = vpack.c.bf16 %v4157_v22, %v4156_v42  ;;  %v4159_v43 = vand.u32 4294901760, %v2867_v19 }
  0x68   :  { %v4160_v52 = vand.u32 4294901760, %v2871_v21  ;;  %v3152_v33 = vpack.c.bf16 %v4164_v14, %v4163_v57  ;;  %v4167_v42 = vand.u32 4294901760, %v2921_v61  ;;  %v4175_v57 = vand.u32 4294901760, %v2954_v45 }
  0x69   :  { %2378 = vmatpush3.bf16.msra.mxu1 %v2377_v27  ;;  %v4158_v27 = vand.u32 4294901760, %v2859_v13  ;;  %v4176_v14 = vand.u32 4294901760, %v2960_v56 }
  0x6a   :  { %2412 = vmatprep.subr.bf16.mxu1 %v2857_v12  ;;  %v3146_v32 = vpack.c.bf16 %v4161_v30, %v4160_v52  ;;  %4165 = vst [vmem:[#allocation25_spill] sm:$0xff] %v3152_v33  ;;  %v3158_v22 = vpack.c.bf16 %v4167_v42, %v4166_v15  ;;  %v4172_v52 = vand.u32 4294901760, %v2939_v31  ;;  %v4173_v30 = vand.u32 4294901760, %v2945_v38 }
  0x6b   :  { %v3140_v47 = vpack.c.bf16 %v4159_v43, %v4158_v27  ;;  %v4169_v43 = vand.u32 4294901760, %v2924_v4  ;;  %v4170_v27 = vand.u32 4294901760, %v2930_v11  ;;  %v3176_v58 = vpack.c.bf16 %v4176_v14, %v4175_v57 }
  0x6c   :  { %4162 = vst [vmem:[#allocation24_spill] sm:$0xff] %v3146_v32  ;;  %4168 = vst [vmem:[#allocation26_spill] sm:$0xff] %v3158_v22  ;;  %v3170_v49 = vpack.c.bf16 %v4173_v30, %v4172_v52  ;;  %v4178_v15 = vand.u32 4294901760, %v2979_v40  ;;  %v4179_v42 = vand.u32 4294901760, %v2981_v41  ;;  %v4184_v52 = vand.u32 4294901760, %v2999_v28 }
  0x6d   :  { %v3164_v7 = vpack.c.bf16 %v4170_v27, %v4169_v43  ;;  %4177 = vst [vmem:[#allocation29_spill] sm:$0xff] %v3176_v58  ;;  %v4181_v43 = vand.u32 4294901760, %v2983_v54  ;;  %v4182_v27 = vand.u32 4294901760, %v2990_v51  ;;  %v4185_v30 = vand.u32 4294901760, %v3008_v44 }
  0x6e   :  { %4174 = vst [vmem:[#allocation28_spill] sm:$0xff] %v3170_v49  ;;  %v3182_v63 = vpack.c.bf16 %v4179_v42, %v4178_v15  ;;  %v4187_v57 = vand.u32 4294901760, %v3018_v16  ;;  %v4188_v14 = vand.u32 4294901760, %v3020_v17  ;;  %v4190_v15 = vand.u32 4294901760, %v3031_v5 }
  0x6f   :  { %4171 = vst [vmem:[#allocation27_spill] sm:$0xff] %v3164_v7  ;;  %v3188_v2 = vpack.c.bf16 %v4182_v27, %v4181_v43  ;;  %v3194_v3 = vpack.c.bf16 %v4185_v30, %v4184_v52  ;;  %v4191_v42 = vand.u32 4294901760, %v3041_v46  ;;  %v4193_v43 = vand.u32 4294901760, %v3045_v62 }
  0x70   :  { %4180 = vst [vmem:[#allocation30_spill] sm:$0xff] %v3182_v63  ;;  %v3200_v1 = vpack.c.bf16 %v4188_v14, %v4187_v57  ;;  %v4194_v27 = vand.u32 4294901760, %v3054_v6  ;;  %v4196_v52 = vand.u32 4294901760, %v3063_v26  ;;  %v134_v58 = vlaneseq }
  0x71   :  { %4183 = vst [vmem:[#allocation31_spill] sm:$0xff] %v3188_v2  ;;  %4186 = vst [vmem:[#allocation32_spill] sm:$0xff] %v3194_v3  ;;  %v3206_v48 = vpack.c.bf16 %v4191_v42, %v4190_v15  ;;  %v3218_v3 = vpack.c.bf16 %v371_v9, %v364_v8  ;;  %v2707_v57 = vpop.eup %2706  ;;  %v4220_v32 = vpack.c.bf16 %v2921_v61, %v2919_v60 }
  0x72   :  { %4189 = vst [vmem:[#allocation33_spill] sm:$0xff] %v3200_v1  ;;  %v3212_v2 = vpack.c.bf16 %v4194_v27, %v4193_v43  ;;  %v3216_v30 = vpack.c.bf16 %v483_v29, %v4196_v52  ;;  %v62_v14 = vadd.f32 1.0, %v2707_v57  ;;  %v2799_v1 = vmov 1983009808  }
  0x73   :  { %4192 = vst [vmem:[#allocation34_spill] sm:$0xff] %v3206_v48  ;;  %4198 = vst [vmem:[#allocation37_spill] sm:$0xff] %v3218_v3  ;;  %v132_v63 = vunpack.c.l.s4 %v2799_v1  ;;  %v135_v42 = vshrl.u32 %v134_v58, 7  ;;  %v3252_v3 = vld [vmem:[#allocation7 + $0x190] sm:$0xff] }
  0x74   :  { %4195 = vst [vmem:[#allocation35_spill] sm:$0xff] %v3212_v2  ;;  %4197 = vst [vmem:[#allocation36_spill] sm:$0xff] %v3216_v30  ;;  %2708 = vrcp.f32 %v62_v14  ;;  %v3254_v30 = vld [vmem:[#allocation7 + $0x198] sm:$0xff]  ;;  %v3265_v2 = vld [vmem:[#allocation7 + $0x1a0] sm:$0xff] }
  0x75   :  { %v133_v15 = vunpack.c.0.s8 %v132_v63  ;;  %4204 = vst [vmem:[#allocation43_spill] sm:$0xff] %v3252_v3  ;;  %4205 = vst [vmem:[#allocation44_spill] sm:$0xff] %v3254_v30 }
  0x76   :  { %4209 = vst [vmem:[#allocation47_spill] sm:$0xff] %v3265_v2 }
  0x77   :  { %v3220_v48 = vsub.s32 %v133_v15, %v135_v42  ;;  %v3244_v42 = vld [vmem:[#allocation7 + $0x180] sm:$0xff] }
  0x78   :  { %4200 = vst [vmem:[#allocation39_spill] sm:$0xff] %v3244_v42  ;;  %v4218_v33 = vand.u32 4294901760, %v3244_v42 }
  0x7e   :  { %v3222_v49 = vpop.eup %2708 }
  0x7f   :  { %v137_v43 = vrot.slane %v3222_v49, %v3220_v48 }
  0x81   :  { %v145_v27 = vcombine.high %v137_v43, %v137_v43  ;;  %v3226_v29 = vand.u32 4294901760, %v137_v43 }
  0x83   :  { %4199 = vst [vmem:[#allocation38_spill] sm:$0xff] %v3226_v29  ;;  %v3228_v8 = vand.u32 4294901760, %v145_v27  ;;  %v3231_v9 = vsub.f32 %v137_v43, %v3226_v29  ;;  %v3246_v43 = vld [vmem:[#allocation7 + $0x188] sm:$0xff] }
  0x84   :  { %4201 = vst [vmem:[#allocation40_spill] sm:$0xff] %v3246_v43 }
  0x85   :  { %v248_v1 = vsub.f32 %v145_v27, %v3228_v8  ;;  %488 = vmatprep.mubr.f32.mxu1 %v3228_v8  ;;  %v4103_v63 = vand.u32 4294901760, %v3231_v9  ;;  %v3248_v27 = vld [vmem:[#allocation7 + $0x100] sm:$0xff] }
  0x86   :  { %490 = vmatmul.mubr.f32.vlgmr.msra.gmra.mrb[0].mxu1 %v3226_v29  ;;  %4202 = vst [vmem:[#allocation41_spill] sm:$0xff] %v3248_v27  ;;  %v3267_v29 = vld [vmem:[#allocation7 + $0x1a8] sm:$0xff]  ;;  %v4222_v7 = vand.u32 4294901760, %v3248_v27 }
  0x87   :  { %v249_v58 = vand.u32 4294901760, %v248_v1  ;;  %v256_v52 = vsub.f32 %v3231_v9, %v4103_v63  ;;  %2414 = vmatpush3.bf16.msra.mxu1 %v2865_v18  ;;  %v3250_v63 = vld [vmem:[#allocation7 + $0x108] sm:$0xff]  ;;  %4210 = vst [vmem:[#allocation48_spill] sm:$0xff] %v3267_v29 }
  0x88   :  { %2416 = vmatprep.subr.bf16.mxu1 %v2869_v20  ;;  %4203 = vst [vmem:[#allocation42_spill] sm:$0xff] %v3250_v63  ;;  %v3320_v22 = vsub.f32 %v3248_v27, %v4222_v7  ;;  %v4223_v60 = vand.u32 4294901760, %v3250_v63 }
  0x89   :  { %v250_v57 = vsub.f32 %v248_v1, %v249_v58  ;;  %732 = vmatprep.mubr.f32.mxu1 %v249_v58  ;;  %v257_v14 = vand.u32 4294901760, %v256_v52  ;;  %v3256_v58 = vld [vmem:[#allocation7 + $0x110] sm:$0xff]  ;;  %v4207_v52 = vpack.c.bf16 %v2867_v19, %v2859_v13  ;;  %v3274_v13 = vld [vmem:[#allocation7 + $0x120] sm:$0xff]  ;;  %v3276_v19 = vld [vmem:[#allocation7 + $0x128] sm:$0xff] }
  0x8a   :  { %4206 = vst [vmem:[#allocation45_spill] sm:$0xff] %v3256_v58  ;;  %4212 = vst [vmem:[#allocation49_spill] sm:$0xff] %v3274_v13  ;;  %v3325_v61 = vsub.f32 %v3250_v63, %v4223_v60  ;;  %v4229_v63 = vand.u32 4294901760, %v3265_v2 }
  0x8b   :  { %v251_v15 = vand.u32 4294901760, %v250_v57  ;;  %2418 = vmatpush3.bf16.msra.mxu1 %v2896_v35  ;;  %4213 = vst [vmem:[#allocation50_spill] sm:$0xff] %v3276_v19  ;;  %v4226_v57 = vand.u32 4294901760, %v3256_v58 }
  0x8c   :  { %2420 = vmatprep.subr.bf16.mxu1 %v2917_v59 }
  0x8d   :  { %252 = vmatprep.mubr.f32.mxu0 %v251_v15  ;;  %v3263_v15 = vld [vmem:[#allocation7 + $0x118] sm:$0xff]  ;;  %v3340_v7 = vsub.f32 %v3256_v58, %v4226_v57  ;;  %v4232_v57 = vand.u32 4294901760, %v3267_v29 }
  0x8e   :  { %258 = vmatmul.mubr.f32.vlgmr.msra.gmra.mrb[0].mxu0 %v257_v14  ;;  %4208 = vst [vmem:[#allocation46_spill] sm:$0xff] %v3263_v15  ;;  %v4211_v14 = vpack.c.bf16 %v2877_v25, %v2871_v21  ;;  %v3284_v25 = vld [vmem:[#allocation7 + $0x1b8] sm:$0xff]  ;;  %v3298_v21 = vsub.f32 %v3244_v42, %v4218_v33  ;;  %v4225_v33 = vand.u32 4294901760, %v3254_v30  ;;  %v4227_v27 = vand.u32 4294901760, %v3263_v15 }
  0x8f   :  { %2382 = vmatpush3.bf16.msra.mxu0 %v4207_v52  ;;  %2422 = vmatpush3.bf16.msra.mxu1 %v2928_v10  ;;  %v3278_v52 = vld [vmem:[#allocation7 + $0x1b0] sm:$0xff]  ;;  %4215 = vst [vmem:[#allocation52_spill] sm:$0xff] %v3284_v25  ;;  %v3360_v58 = vsub.f32 %v3267_v29, %v4232_v57 }
  0x90   :  { %2384 = vmatprep.subr.bf16.mxu0 %v4211_v14  ;;  %2424 = vmatprep.subr.bf16.mxu1 %v2943_v34  ;;  %4214 = vst [vmem:[#allocation51_spill] sm:$0xff] %v3278_v52  ;;  %v3286_v14 = vld [vmem:[#allocation7 + $0x130] sm:$0xff]  ;;  %v3303_v34 = vld [vmem:[#allocation7 + $0x138] sm:$0xff]  ;;  %v3345_v60 = vsub.f32 %v3263_v15, %v4227_v27  ;;  %v4234_v27 = vand.u32 4294901760, %v3274_v13  ;;  %v4238_v57 = vand.u32 4294901760, %v3278_v52 }
  0x91   :  { %625 = vmatprep.mubr.f32.mxu0 %v248_v1  ;;  %4216 = vst [vmem:[#allocation53_spill] sm:$0xff] %v3286_v14  ;;  %v4217_v1 = vpack.c.bf16 %v2900_v37, %v2898_v36  ;;  %4219 = vst [vmem:[#allocation54_spill] sm:$0xff] %v3303_v34  ;;  %v4221_v36 = vand.u32 4294901760, %v3246_v43 }
  0x92   :  { %4228 = vst [vmem:[#allocation55_spill] sm:$0xff] %v3345_v60  ;;  %4233 = vst [vmem:[#allocation57_spill] sm:$0xff] %v3360_v58  ;;  %v3365_v15 = vsub.f32 %v3274_v13, %v4234_v27  ;;  %v3380_v29 = vsub.f32 %v3278_v52, %v4238_v57  ;;  %v4239_v27 = vand.u32 4294901760, %v3284_v25  ;;  %v3414_v57 = vld [vmem:[#allocation7 + $0x1d8] sm:$0xff]  ;;  %v3416_v52 = vld [vmem:[#allocation7 + $0x150] sm:$0xff] }
  0x93   :  { %2386 = vmatpush3.bf16.msra.mxu0 %v4217_v1  ;;  %2426 = vmatpush3.bf16.msra.mxu1 %v2958_v55  ;;  %v3312_v37 = vsub.f32 %v3246_v43, %v4221_v36  ;;  %v3335_v1 = vsub.f32 %v3254_v30, %v4225_v33  ;;  %v4231_v33 = vpack.c.bf16 %v2930_v11, %v2924_v4  ;;  %v4237_v11 = vld [vmem:[#allocation18_spill] sm:$0xff]  ;;  %v4244_v30 = vand.u32 4294901760, %v3303_v34  ;;  %v3467_v55 = vld [vmem:[#allocation7 + $0x1f8] sm:$0xff] }
  0x94   :  { %2388 = vmatprep.subr.bf16.mxu0 %v4220_v32  ;;  %2428 = vmatprep.subr.bf16.mxu1 %v2977_v39  ;;  %v4224_v32 = vand.u32 4294901760, %v3252_v3  ;;  %v4236_v4 = vpack.c.bf16 %v2945_v38, %v2939_v31  ;;  %v3385_v13 = vsub.f32 %v3284_v25, %v4239_v27  ;;  %v3392_v31 = vld [vmem:[#allocation7 + $0x1c0] sm:$0xff]  ;;  %v3394_v38 = vld [vmem:[#allocation7 + $0x1c8] sm:$0xff]  ;;  %4247 = vst [vmem:[#allocation63_spill] sm:$0xff] %v3414_v57 }
  0x95   :  { %4241 = vst [vmem:[#allocation58_spill] sm:$0xff] %v3392_v31  ;;  %v3402_v27 = vld [vmem:[#allocation7 + $0x148] sm:$0xff]  ;;  %v4248_v43 = vpack.c.bf16 %v2960_v56, %v2954_v45  ;;  %v4252_v45 = vld [vmem:[#allocation20_spill] sm:$0xff]  ;;  %v4255_v39 = vpack.c.bf16 %v2990_v51, %v2983_v54  ;;  %v4261_v42 = vand.u32 4294901760, %v3394_v38  ;;  %v4271_v51 = vand.u32 4294901760, %v3416_v52 }
  0x96   :  { %v3330_v36 = vsub.f32 %v3252_v3, %v4224_v32  ;;  %v3350_v32 = vsub.f32 %v3265_v2, %v4229_v63  ;;  %v4235_v63 = vand.u32 4294901760, %v3276_v19  ;;  %v3400_v2 = vld [vmem:[#allocation7 + $0x140] sm:$0xff]  ;;  %4243 = vst [vmem:[#allocation60_spill] sm:$0xff] %v3402_v27  ;;  %v4249_v25 = vld [vmem:[#allocation19_spill] sm:$0xff] }
  0x97   :  { %2390 = vmatpush3.bf16.msra.mxu0 %v4231_v33  ;;  %2430 = vmatpush3.bf16.msra.mxu1 %v2988_v50  ;;  %4242 = vst [vmem:[#allocation59_spill] sm:$0xff] %v3400_v2  ;;  %v3412_v33 = vld [vmem:[#allocation7 + $0x1d0] sm:$0xff]  ;;  %v4251_v50 = vpack.c.bf16 %v2981_v41, %v2979_v40  ;;  %v4256_v40 = vld [vmem:[#allocation21_spill] sm:$0xff]  ;;  %v4257_v41 = vand.u32 4294901760, %v3392_v31  ;;  %v4260_v54 = vld [vmem:[#allocation22_spill] sm:$0xff] }
  0x98   :  { %4230 = vst [vmem:[#allocation56_spill] sm:$0xff] %v3350_v32  ;;  %v3370_v3 = vsub.f32 %v3276_v19, %v4235_v63  ;;  %2392 = vmatprep.subr.bf16.mxu0 %v4236_v4  ;;  %2432 = vmatprep.subr.bf16.mxu1 %v4237_v11  ;;  %v4240_v63 = vand.u32 4294901760, %v3286_v14  ;;  %v3410_v4 = vsub.f32 %v3303_v34, %v4244_v30  ;;  %4246 = vst [vmem:[#allocation62_spill] sm:$0xff] %v3412_v33  ;;  %v3426_v34 = vld [vmem:[#allocation7 + $0x158] sm:$0xff]  ;;  %v3428_v11 = vld [vmem:[#allocation7 + $0x1e0] sm:$0xff] }
  0x99   :  { %4250 = vst [vmem:[#allocation64_spill] sm:$0xff] %v3428_v11  ;;  %v3440_v30 = vld [vmem:[#allocation7 + $0x160] sm:$0xff]  ;;  %v3448_v56 = vld [vmem:[#allocation7 + $0x1f0] sm:$0xff] }
  0x9a   :  { %v3390_v19 = vsub.f32 %v3286_v14, %v4240_v63  ;;  %4245 = vst [vmem:[#allocation61_spill] sm:$0xff] %v3410_v4  ;;  %v3438_v63 = vld [vmem:[#allocation7 + $0x1e8] sm:$0xff]  ;;  %v4267_v14 = vand.u32 4294901760, %v3412_v33 }
  0x9b   :  { %2394 = vmatpush3.bf16.msra.mxu0 %v4248_v43  ;;  %2434 = vmatpush3.bf16.msra.mxu1 %v4249_v25  ;;  %4253 = vst [vmem:[#allocation65_spill] sm:$0xff] %v3438_v63  ;;  %v3462_v25 = vsub.f32 %v3392_v31, %v4257_v41  ;;  %v3478_v31 = vld [vmem:[#allocation7 + $0x178] sm:$0xff] }
  0x9c   :  { %2396 = vmatprep.subr.bf16.mxu0 %v4251_v50  ;;  %2436 = vmatprep.subr.bf16.mxu1 %v4252_v45  ;;  %v3446_v50 = vld [vmem:[#allocation7 + $0x168] sm:$0xff]  ;;  %v130_v45 = vcombine.high %v3222_v49, %v3222_v49  ;;  %v3469_v49 = vld [vmem:[#allocation7 + $0x170] sm:$0xff] }
  0x9d   :  { %4254 = vst [vmem:[#allocation66_spill] sm:$0xff] %v3446_v50  ;;  %4258 = vst [vmem:[#allocation67_spill] sm:$0xff] %v3462_v25 }
  0x9e   :  { %v3481_v43 = vrot.slane %v130_v45, %v3220_v48  ;;  %v3501_v48 = vsub.f32 %v3412_v33, %v4267_v14  ;;  %v4269_v45 = vand.u32 4294901760, %v3414_v57  ;;  %v4273_v14 = vld [vmem:[#allocation23_spill] sm:$0xff]  ;;  %v4274_v33 = vand.u32 4294901760, %v3426_v34 }
  0x9f   :  { %2398 = vmatpush3.bf16.msra.mxu0 %v4255_v39  ;;  %2438 = vmatpush3.bf16.msra.mxu1 %v4256_v40  ;;  %v4259_v39 = vpack.c.bf16 %v3008_v44, %v2999_v28  ;;  %v3486_v40 = vsub.f32 %v3394_v38, %v4261_v42  ;;  %v4263_v28 = vand.u32 4294901760, %v3400_v2 }
  0xa0   :  { %2440 = vmatprep.subr.bf16.mxu1 %v4260_v54  ;;  %4268 = vst [vmem:[#allocation70_spill] sm:$0xff] %v3501_v48  ;;  %v3506_v42 = vsub.f32 %v3414_v57, %v4269_v45  ;;  %v3522_v45 = vsub.f32 %v3426_v34, %v4274_v33  ;;  %v4275_v57 = vand.u32 4294901760, %v3428_v11  ;;  %v4288_v33 = vand.u32 4294901760, %v3312_v37 }
  0xa1   :  { %2400 = vmatprep.subr.bf16.mxu0 %v4259_v39  ;;  %4262 = vst [vmem:[#allocation22_spill] sm:$0xff] %v3486_v40  ;;  %v3491_v44 = vsub.f32 %v3400_v2, %v4263_v28  ;;  %v4265_v39 = vand.u32 4294901760, %v3402_v27  ;;  %v3511_v28 = vsub.f32 %v3416_v52, %v4271_v51  ;;  %v4276_v2 = vand.u32 4294901760, %v3438_v63 }
  0xa2   :  { %4270 = vst [vmem:[#allocation71_spill] sm:$0xff] %v3506_v42  ;;  %v3527_v51 = vsub.f32 %v3428_v11, %v4275_v57  ;;  %v4279_v11 = vand.u32 4294901760, %v3446_v50 }
  0xa3   :  { %4264 = vst [vmem:[#allocation68_spill] sm:$0xff] %v3491_v44  ;;  %v3496_v41 = vsub.f32 %v3402_v27, %v4265_v39  ;;  %v4272_v27 = vpack.c.bf16 %v3020_v17, %v3018_v16  ;;  %2442 = vmatpush3.bf16.msra.mxu1 %v4273_v14  ;;  %v3532_v39 = vsub.f32 %v3438_v63, %v4276_v2  ;;  %v4280_v16 = vand.u32 4294901760, %v3448_v56 }
  0xa4   :  { %v4277_v17 = vpack.c.bf16 %v3041_v46, %v3031_v5  ;;  %2476 = vmatprep.subr.bf16.mxu1 %v2857_v12  ;;  %v3548_v2 = vsub.f32 %v3446_v50, %v4279_v11  ;;  %v4282_v50 = vand.u32 4294901760, %v3467_v55  ;;  %v4283_v46 = vand.u32 4294901760, %v3469_v49 }
  0xa5   :  { %4266 = vst [vmem:[#allocation69_spill] sm:$0xff] %v3496_v41  ;;  %2402 = vmatpush3.bf16.msra.mxu0 %v4272_v27  ;;  %v4278_v27 = vand.u32 4294901760, %v3440_v30  ;;  %v3553_v63 = vsub.f32 %v3448_v56, %v4280_v16 }
  0xa6   :  { %2404 = vmatprep.subr.bf16.mxu0 %v4277_v17  ;;  %v3566_v16 = vsub.f32 %v3467_v55, %v4282_v50  ;;  %v3571_v12 = vsub.f32 %v3469_v49, %v4283_v46  ;;  %v4284_v17 = vpack.c.bf16 %v3054_v6, %v3045_v62  ;;  %v4285_v50 = vand.u32 4294901760, %v3478_v31 }
  0xa7   :  { %v3543_v57 = vsub.f32 %v3440_v30, %v4278_v27  ;;  %v4281_v27 = vand.u32 4294901760, %v3231_v9  ;;  %v4286_v46 = vpack.c.bf16 %v3072_v53, %v3063_v26  ;;  %v4291_v26 = vand.u32 4294901760, %v3325_v61 }
  0xa8   :  { %v3583_v5 = vsub.f32 %v3478_v31, %v4285_v50  ;;  %v4290_v50 = vand.u32 4294901760, %v3320_v22  ;;  %v4296_v6 = vand.u32 4294901760, %v3340_v7  ;;  %v4297_v62 = vand.u32 4294901760, %v3345_v60 }
  0xa9   :  { %736 = vmatmul.mubr.f32.vlgmr.msra.gmra.mrb[2].mxu1 %v4281_v27  ;;  %2406 = vmatpush3.bf16.msra.mxu0 %v4284_v17  ;;  %v4287_v17 = vand.u32 4294901760, %v3298_v21  ;;  %v4300_v27 = vand.u32 4294901760, %v3360_v58 }
  0xaa   :  { %2478 = vmatpush3.bf16.msra.mxu1 %v2865_v18  ;;  %2408 = vmatprep.subr.bf16.mxu0 %v4286_v46  ;;  %v3603_v53 = vpack.c.bf16 %v4291_v26, %v4290_v50  ;;  %v4294_v46 = vand.u32 4294901760, %v3335_v1  ;;  %v4309_v26 = vand.u32 4294901760, %v3390_v19  ;;  %v4310_v50 = vand.u32 4294901760, %v3410_v4 }
  0xab   :  { %2480 = vmatprep.subr.bf16.mxu1 %v2869_v20  ;;  %v3596_v11 = vpack.c.bf16 %v4288_v33, %v4287_v17  ;;  %1006 = vmatprep.mubr.f32.mxu1 %v3228_v8  ;;  %v4293_v20 = vand.u32 4294901760, %v3330_v36  ;;  %v3615_v33 = vpack.c.bf16 %v4297_v62, %v4296_v6  ;;  %v4299_v17 = vand.u32 4294901760, %v3350_v32 }
  0xac   :  { %4292 = vst [vmem:[#allocation72_spill] sm:$0xff] %v3603_v53  ;;  %v4302_v53 = vand.u32 4294901760, %v3365_v15  ;;  %v4306_v62 = vand.u32 4294901760, %v3385_v13 }
  0xad   :  { %4289 = vst [vmem:[#allocation23_spill] sm:$0xff] %v3596_v11  ;;  %v3609_v18 = vpack.c.bf16 %v4294_v46, %v4293_v20  ;;  %4298 = vst [vmem:[#allocation74_spill] sm:$0xff] %v3615_v33  ;;  %v3621_v11 = vpack.c.bf16 %v4300_v27, %v4299_v17  ;;  %v4303_v20 = vand.u32 4294901760, %v3370_v3  ;;  %v4308_v27 = vpack.c.bf16 %v3083_v0, %v3077_v24  ;;  %v4363_v33 = vld [vmem:[#allocation32_spill] sm:$0xff] }
  0xae   :  { %2482 = vmatpush3.bf16.msra.mxu1 %v2896_v35  ;;  %v4316_v24 = vand.u32 4294901760, %v3496_v41  ;;  %v4318_v35 = vand.u32 4294901760, %v3501_v48  ;;  %v4324_v17 = vand.u32 4294901760, %v3527_v51 }
  0xaf   :  { %4295 = vst [vmem:[#allocation73_spill] sm:$0xff] %v3609_v18  ;;  %4301 = vst [vmem:[#allocation75_spill] sm:$0xff] %v3621_v11  ;;  %v3629_v46 = vpack.c.bf16 %v4303_v20, %v4302_v53  ;;  %v4305_v18 = vand.u32 4294901760, %v3380_v29  ;;  %2410 = vmatpush3.bf16.msra.mxu0 %v4308_v27  ;;  %v3646_v53 = vpack.c.bf16 %v4310_v50, %v4309_v26  ;;  %v4312_v20 = vand.u32 4294901760, %v3462_v25 }
  0xb0   :  { %2444 = vmatprep.subr.bf16.mxu0 %v3134_v23  ;;  %2484 = vmatprep.subr.bf16.mxu1 %v2917_v59  ;;  %v4319_v50 = vand.u32 4294901760, %v3506_v42  ;;  %v4321_v27 = vand.u32 4294901760, %v3511_v28  ;;  %v4327_v59 = vand.u32 4294901760, %v3543_v57  ;;  %v4328_v23 = vand.u32 4294901760, %v3548_v2 }
  0xb1   :  { %4304 = vst [vmem:[#allocation76_spill] sm:$0xff] %v3629_v46  ;;  %v3635_v6 = vpack.c.bf16 %v4306_v62, %v4305_v18  ;;  %4311 = vst [vmem:[#allocation78_spill] sm:$0xff] %v3646_v53  ;;  %v4313_v46 = vand.u32 4294901760, %v3486_v40  ;;  %v4315_v62 = vand.u32 4294901760, %v3491_v44  ;;  %v4361_v53 = vand.u32 4294901760, %v3350_v32 }
  0xb2   :  { %v3666_v26 = vpack.c.bf16 %v4319_v50, %v4318_v35  ;;  %v4330_v35 = vand.u32 4294901760, %v3553_v63  ;;  %v4331_v50 = vand.u32 4294901760, %v3566_v16  ;;  %628 = vmatmul.mubr.f32.vlgmr.msra.gmra.mrb[2].mxu0 %v3231_v9  ;;  %2486 = vmatpush3.bf16.msra.mxu1 %v2928_v10  ;;  %v4343_v9 = vld [vmem:[#allocation17_spill] sm:$0xff]  ;;  %v4345_v10 = vld [vmem:[#allocation18_spill] sm:$0xff] }
  0xb3   :  { %4307 = vst [vmem:[#allocation77_spill] sm:$0xff] %v3635_v6  ;;  %v3652_v18 = vpack.c.bf16 %v4313_v46, %v4312_v20  ;;  %v3658_v0 = vpack.c.bf16 %v4316_v24, %v4315_v62  ;;  %v4322_v46 = vand.u32 4294901760, %v3522_v45  ;;  %v4325_v62 = vand.u32 4294901760, %v3532_v39  ;;  %2446 = vmatpush3.bf16.msra.mxu0 %v3140_v47  ;;  %902 = vmatprep.mubr.f32.mxu0 %v3228_v8  ;;  %v4344_v47 = vld [vmem:[#allocation28_spill] sm:$0xff] }
  0xb4   :  { %4320 = vst [vmem:[#allocation81_spill] sm:$0xff] %v3666_v26  ;;  %v3690_v26 = vpack.c.bf16 %v4331_v50, %v4330_v35  ;;  %v4340_v35 = vld [vmem:[#allocation26_spill] sm:$0xff]  ;;  %v4341_v50 = vld [vmem:[#allocation16_spill] sm:$0xff]  ;;  %v4362_v6 = vand.u32 4294901760, %v3360_v58 }
  0xb5   :  { %4314 = vst [vmem:[#allocation79_spill] sm:$0xff] %v3652_v18  ;;  %4317 = vst [vmem:[#allocation80_spill] sm:$0xff] %v3658_v0  ;;  %v3672_v20 = vpack.c.bf16 %v4322_v46, %v4321_v27  ;;  %v3678_v24 = vpack.c.bf16 %v4325_v62, %v4324_v17  ;;  %v3684_v0 = vpack.c.bf16 %v4328_v23, %v4327_v59  ;;  %v4333_v27 = vand.u32 4294901760, %v3571_v12  ;;  %v4336_v17 = vld [vmem:[#allocation24_spill] sm:$0xff]  ;;  %v4337_v62 = vld [vmem:[#allocation14_spill] sm:$0xff] }
  0xb6   :  { %4332 = vst [vmem:[#allocation85_spill] sm:$0xff] %v3690_v26  ;;  %v4334_v46 = vand.u32 4294901760, %v3583_v5  ;;  %2448 = vmatprep.subr.bf16.mxu0 %v4336_v17  ;;  %2488 = vmatprep.subr.bf16.mxu1 %v4337_v62  ;;  %v4338_v59 = vld [vmem:[#allocation25_spill] sm:$0xff]  ;;  %v4339_v23 = vld [vmem:[#allocation15_spill] sm:$0xff]  ;;  %v4347_v17 = vand.u32 4294901760, %v3312_v37  ;;  %v4354_v26 = vand.u32 4294901760, %v3330_v36  ;;  %v1276_v11 = vsub.f32 %v3360_v58, %v4362_v6 }
  0xb7   :  { %4323 = vst [vmem:[#allocation82_spill] sm:$0xff] %v3672_v20  ;;  %4326 = vst [vmem:[#allocation83_spill] sm:$0xff] %v3678_v24  ;;  %2450 = vmatpush3.bf16.msra.mxu0 %v4338_v59  ;;  %2490 = vmatpush3.bf16.msra.mxu1 %v4339_v23  ;;  %v146_v59 = vcombine.high %v3481_v43, %v3481_v43  ;;  %v4348_v23 = vld [vmem:[#allocation29_spill] sm:$0xff] }
  0xb8   :  { %4329 = vst [vmem:[#allocation84_spill] sm:$0xff] %v3684_v0  ;;  %v3696_v20 = vpack.c.bf16 %v4334_v46, %v4333_v27  ;;  %2452 = vmatprep.subr.bf16.mxu0 %v4340_v35  ;;  %2492 = vmatprep.subr.bf16.mxu1 %v4341_v50  ;;  %v4342_v27 = vld [vmem:[#allocation27_spill] sm:$0xff]  ;;  %v4346_v46 = vand.u32 4294901760, %v3298_v21  ;;  %v1248_v62 = vsub.f32 %v3312_v37, %v4347_v17  ;;  %v4350_v50 = vand.u32 4294901760, %v3320_v22  ;;  %v4366_v58 = vld [vmem:[#allocation33_spill] sm:$0xff] }
  0xb9   :  { %v4349_v35 = vld [vmem:[#allocation19_spill] sm:$0xff]  ;;  %v3736_v24 = vand.u32 4294901760, %v146_v59 }
  0xba   :  { %4335 = vst [vmem:[#allocation86_spill] sm:$0xff] %v3696_v20  ;;  %v1241_v8 = vsub.f32 %v3298_v21, %v4346_v46  ;;  %v4353_v46 = vld [vmem:[#allocation20_spill] sm:$0xff]  ;;  %v1249_v20 = vand.u32 4294901760, %v1248_v62  ;;  %v4360_v62 = vld [vmem:[#allocation21_spill] sm:$0xff] }
  0xbb   :  { %2454 = vmatpush3.bf16.msra.mxu0 %v4342_v27  ;;  %2494 = vmatpush3.bf16.msra.mxu1 %v4343_v9  ;;  %v1129_v27 = vsub.f32 %v3320_v22, %v4350_v50  ;;  %v4351_v9 = vand.u32 4294901760, %v3325_v61  ;;  %4356 = vst [vmem:[#allocation24_spill] sm:$0xff] %v3736_v24  ;;  %v4357_v50 = vand.u32 4294901760, %v3340_v7 }
  0xbc   :  { %2456 = vmatprep.subr.bf16.mxu0 %v4344_v47  ;;  %2496 = vmatprep.subr.bf16.mxu1 %v4345_v10  ;;  %v4352_v10 = vld [vmem:[#allocation30_spill] sm:$0xff]  ;;  %v1242_v17 = vand.u32 4294901760, %v1241_v8  ;;  %v4359_v8 = vld [vmem:[#allocation31_spill] sm:$0xff] }
  0xbd   :  { %v1136_v47 = vsub.f32 %v3325_v61, %v4351_v9  ;;  %v1143_v9 = vsub.f32 %v3340_v7, %v4357_v50  ;;  %v1130_v18 = vand.u32 4294901760, %v1129_v27 }
  0xbe   :  { %v2539_v50 = vpack.c.bf16 %v1249_v20, %v1242_v17  ;;  %v4367_v20 = vld [vmem:[#allocation34_spill] sm:$0xff]  ;;  %v4368_v17 = vand.u32 4294901760, %v3380_v29 }
  0xbf   :  { %2458 = vmatpush3.bf16.msra.mxu0 %v4348_v23  ;;  %2498 = vmatpush3.bf16.msra.mxu1 %v4349_v35  ;;  %v1255_v23 = vsub.f32 %v3330_v36, %v4354_v26  ;;  %v4355_v35 = vand.u32 4294901760, %v3335_v1  ;;  %v1137_v26 = vand.u32 4294901760, %v1136_v47  ;;  %v1144_v27 = vand.u32 4294901760, %v1143_v9 }
  0xc0   :  { %2460 = vmatprep.subr.bf16.mxu0 %v4352_v10  ;;  %2500 = vmatprep.subr.bf16.mxu1 %v4353_v46  ;;  %v4358_v10 = vand.u32 4294901760, %v3345_v60  ;;  %v4369_v9 = vand.u32 4294901760, %v3385_v13 }
  0xc1   :  { %v1262_v0 = vsub.f32 %v3335_v1, %v4355_v35  ;;  %v1269_v35 = vsub.f32 %v3350_v32, %v4361_v53  ;;  %v4365_v32 = vand.u32 4294901760, %v3370_v3 }
  0xc2   :  { %v1150_v46 = vsub.f32 %v3345_v60, %v4358_v10  ;;  %v1256_v10 = vand.u32 4294901760, %v1255_v23  ;;  %v1283_v23 = vsub.f32 %v3380_v29, %v4368_v17  ;;  %v4376_v17 = vand.u32 4294901760, %v3390_v19 }
  0xc3   :  { %2462 = vmatpush3.bf16.msra.mxu0 %v4359_v8  ;;  %2502 = vmatpush3.bf16.msra.mxu1 %v4360_v62  ;;  %v1263_v60 = vand.u32 4294901760, %v1262_v0  ;;  %v3755_v8 = vsub.f32 %v146_v59, %v3736_v24  ;;  %v4364_v62 = vand.u32 4294901760, %v3365_v15  ;;  %v1164_v6 = vsub.f32 %v3370_v3, %v4365_v32 }
  0xc4   :  { %2464 = vmatprep.subr.bf16.mxu0 %v4363_v33  ;;  %2504 = vmatprep.subr.bf16.mxu1 %v4260_v54  ;;  %v1151_v47 = vand.u32 4294901760, %v1150_v46  ;;  %v2541_v54 = vpack.c.bf16 %v1137_v26, %v1130_v18  ;;  %v1270_v33 = vand.u32 4294901760, %v1269_v35  ;;  %v1277_v0 = vand.u32 4294901760, %v1276_v11  ;;  %v4374_v11 = vld [vmem:[#allocation38_spill] sm:$0xff] }
  0xc5   :  { %v1157_v53 = vsub.f32 %v3365_v15, %v4364_v62  ;;  %v2543_v59 = vpack.c.bf16 %v1263_v60, %v1256_v10  ;;  %v1290_v46 = vsub.f32 %v3385_v13, %v4369_v9  ;;  %v4375_v10 = vld [vmem:[#allocation35_spill] sm:$0xff]  ;;  %v1171_v9 = vsub.f32 %v3390_v19, %v4376_v17 }
  0xc6   :  { %v2545_v35 = vpack.c.bf16 %v1151_v47, %v1144_v27  ;;  %v4377_v32 = vand.u32 4294901760, %v3410_v4  ;;  %v4379_v27 = vand.u32 4294901760, %v3462_v25  ;;  %v4386_v17 = vand.u32 4294901760, %v3491_v44 }
  0xc7   :  { %2466 = vmatpush3.bf16.msra.mxu0 %v4366_v58  ;;  %2506 = vmatpush3.bf16.msra.mxu1 %v4273_v14  ;;  %v4370_v58 = vld [vmem:[#allocation39_spill] sm:$0xff]  ;;  %v4372_v14 = vld [vmem:[#allocation40_spill] sm:$0xff]  ;;  %v1158_v60 = vand.u32 4294901760, %v1157_v53  ;;  %v4380_v53 = vand.u32 4294901760, %v3486_v40 }
  0xc8   :  { %2468 = vmatprep.subr.bf16.mxu0 %v4367_v20  ;;  %2540 = vmatprep.subr.bf16.mxu1 %v2539_v50  ;;  %v4371_v62 = vand.u32 4294901760, %v4370_v58  ;;  %v4373_v18 = vand.u32 4294901760, %v4372_v14  ;;  %v1165_v50 = vand.u32 4294901760, %v1164_v6  ;;  %v2547_v20 = vpack.c.bf16 %v1277_v0, %v1270_v33  ;;  %v4378_v14 = vld [vmem:[#allocation36_spill] sm:$0xff]  ;;  %v4382_v0 = vld [vmem:[#allocation41_spill] sm:$0xff] }
  0xc9   :  { %v1178_v58 = vsub.f32 %v3410_v4, %v4377_v32  ;;  %v1297_v47 = vsub.f32 %v3462_v25, %v4379_v27  ;;  %v1304_v6 = vsub.f32 %v3486_v40, %v4380_v53  ;;  %v4383_v32 = vand.u32 4294901760, %v4382_v0  ;;  %v4388_v40 = vld [vmem:[#allocation37_spill] sm:$0xff]  ;;  %v4397_v25 = vld [vmem:[#allocation46_spill] sm:$0xff] }
  0xca   :  { %v3777_v26 = vpack.c.bf16 %v4373_v18, %v4371_v62  ;;  %1008 = vmatmul.mubr.f32.vlgmr.msra.gmra.mrb[4].mxu1 %v4374_v11  ;;  %v1284_v62 = vand.u32 4294901760, %v1283_v23  ;;  %v1291_v18 = vand.u32 4294901760, %v1290_v46  ;;  %v2549_v46 = vpack.c.bf16 %v1165_v50, %v1158_v60  ;;  %v4391_v50 = vld [vmem:[#allocation43_spill] sm:$0xff] }
  0xcb   :  { %2470 = vmatpush3.bf16.msra.mxu0 %v4375_v10  ;;  %2542 = vmatpush3.bf16.msra.mxu1 %v2541_v54  ;;  %v4381_v54 = vand.u32 4294901760, %v3755_v8  ;;  %v4384_v10 = vld [vmem:[#allocation42_spill] sm:$0xff]  ;;  %v4387_v27 = vand.u32 4294901760, %v3496_v41  ;;  %v4389_v0 = vand.u32 4294901760, %v3501_v48 }
  0xcc   :  { %2472 = vmatprep.subr.bf16.mxu0 %v4378_v14  ;;  %2544 = vmatprep.subr.bf16.mxu1 %v2543_v59  ;;  %v4385_v59 = vand.u32 4294901760, %v4384_v10  ;;  %v1185_v14 = vsub.f32 %v3491_v44, %v4386_v17  ;;  %v4393_v17 = vld [vmem:[#allocation44_spill] sm:$0xff] }
  0xcd   :  { %v1112_v33 = vsub.f32 %v3755_v8, %v4381_v54  ;;  %1350 = vmatprep.mubr.f32.mxu1 %v3736_v24  ;;  %v1192_v53 = vsub.f32 %v3496_v41, %v4387_v27  ;;  %v1172_v54 = vand.u32 4294901760, %v1171_v9  ;;  %v1179_v24 = vand.u32 4294901760, %v1178_v58  ;;  %v4395_v58 = vld [vmem:[#allocation45_spill] sm:$0xff] }
  0xce   :  { %v3802_v23 = vpack.c.bf16 %v4385_v59, %v4383_v32  ;;  %v1311_v10 = vsub.f32 %v3501_v48, %v4389_v0  ;;  %v4390_v32 = vand.u32 4294901760, %v3506_v42  ;;  %v4392_v59 = vand.u32 4294901760, %v4391_v50 }
  0xcf   :  { %2474 = vmatpush3.bf16.msra.mxu0 %v4388_v40  ;;  %2546 = vmatpush3.bf16.msra.mxu1 %v2545_v35  ;;  %v4394_v44 = vand.u32 4294901760, %v4393_v17  ;;  %v2551_v40 = vpack.c.bf16 %v1291_v18, %v1284_v62  ;;  %v1298_v35 = vand.u32 4294901760, %v1297_v47  ;;  %v1305_v9 = vand.u32 4294901760, %v1304_v6  ;;  %v4401_v18 = vld [vmem:[#allocation47_spill] sm:$0xff] }
  0xd0   :  { %v1318_v60 = vsub.f32 %v3506_v42, %v4390_v32  ;;  %2508 = vmatprep.subr.bf16.mxu0 %v3777_v26  ;;  %2548 = vmatprep.subr.bf16.mxu1 %v2547_v20  ;;  %v4396_v41 = vand.u32 4294901760, %v4395_v58  ;;  %v4398_v0 = vand.u32 4294901760, %v4397_v25  ;;  %v1113_v4 = vand.u32 4294901760, %v1112_v33  ;;  %v4403_v25 = vld [vmem:[#allocation48_spill] sm:$0xff] }
  0xd1   :  { %v3822_v27 = vpack.c.bf16 %v4394_v44, %v4392_v59  ;;  %v1186_v32 = vand.u32 4294901760, %v1185_v14  ;;  %v1193_v42 = vand.u32 4294901760, %v1192_v53  ;;  %v4399_v50 = vand.u32 4294901760, %v3511_v28 }
  0xd2   :  { %v3828_v48 = vpack.c.bf16 %v4398_v0, %v4396_v41  ;;  %904 = vmatmul.mubr.f32.vlgmr.msra.gmra.mrb[4].mxu0 %v4374_v11  ;;  %v4400_v20 = vand.u32 4294901760, %v3522_v45  ;;  %v4402_v47 = vand.u32 4294901760, %v4401_v18  ;;  %v4404_v41 = vand.u32 4294901760, %v4403_v25  ;;  %v4409_v18 = vld [vmem:[#allocation50_spill] sm:$0xff] }
  0xd3   :  { %v1199_v44 = vsub.f32 %v3511_v28, %v4399_v50  ;;  %2510 = vmatpush3.bf16.msra.mxu0 %v3802_v23  ;;  %2550 = vmatpush3.bf16.msra.mxu1 %v2549_v46  ;;  %v2553_v11 = vpack.c.bf16 %v1179_v24, %v1172_v54  ;;  %v1312_v33 = vand.u32 4294901760, %v1311_v10  ;;  %v1319_v14 = vand.u32 4294901760, %v1318_v60  ;;  %v4407_v50 = vld [vmem:[#allocation49_spill] sm:$0xff]  ;;  %v4411_v24 = vld [vmem:[#allocation51_spill] sm:$0xff]  ;;  %v4413_v10 = vld [vmem:[#allocation52_spill] sm:$0xff] }
  0xd4   :  { %v1206_v62 = vsub.f32 %v3522_v45, %v4400_v20  ;;  %v3842_v6 = vpack.c.bf16 %v4404_v41, %v4402_v47  ;;  %2512 = vmatprep.subr.bf16.mxu0 %v3822_v27  ;;  %2552 = vmatprep.subr.bf16.mxu1 %v2551_v40  ;;  %v2555_v53 = vpack.c.bf16 %v1305_v9, %v1298_v35  ;;  %v4405_v59 = vand.u32 4294901760, %v3527_v51 }
  0xd5   :  { %v4406_v58 = vand.u32 4294901760, %v3532_v39  ;;  %v4408_v20 = vand.u32 4294901760, %v4407_v50  ;;  %v4410_v47 = vand.u32 4294901760, %v4409_v18  ;;  %1114 = vmatprep.mubr.f32.mxu0 %v1113_v4  ;;  %v4412_v54 = vand.u32 4294901760, %v4411_v24 }
  0xd6   :  { %v1325_v17 = vsub.f32 %v3527_v51, %v4405_v59  ;;  %v4414_v60 = vand.u32 4294901760, %v4413_v10  ;;  %v2557_v35 = vpack.c.bf16 %v1193_v42, %v1186_v32  ;;  %v1200_v9 = vand.u32 4294901760, %v1199_v44 }
  0xd7   :  { %v1332_v0 = vsub.f32 %v3532_v39, %v4406_v58  ;;  %v3855_v46 = vpack.c.bf16 %v4410_v47, %v4408_v20  ;;  %v1207_v25 = vand.u32 4294901760, %v1206_v62  ;;  %2514 = vmatpush3.bf16.msra.mxu0 %v3828_v48  ;;  %2554 = vmatpush3.bf16.msra.mxu1 %v2553_v11  ;;  %v2559_v41 = vpack.c.bf16 %v1319_v14, %v1312_v33  ;;  %v4419_v11 = vld [vmem:[#allocation53_spill] sm:$0xff]  ;;  %v4421_v14 = vld [vmem:[#allocation54_spill] sm:$0xff] }
  0xd8   :  { %v3861_v40 = vpack.c.bf16 %v4414_v60, %v4412_v54  ;;  %v4415_v59 = vand.u32 4294901760, %v3543_v57  ;;  %v4416_v50 = vand.u32 4294901760, %v3548_v2  ;;  %2516 = vmatprep.subr.bf16.mxu0 %v3842_v6  ;;  %2556 = vmatprep.subr.bf16.mxu1 %v2555_v53  ;;  %v1326_v20 = vand.u32 4294901760, %v1325_v17 }
  0xd9   :  { %v1333_v18 = vand.u32 4294901760, %v1332_v0  ;;  %v4417_v42 = vand.u32 4294901760, %v3553_v63  ;;  %v4418_v44 = vand.u32 4294901760, %v3566_v16  ;;  %v4420_v33 = vand.u32 4294901760, %v4419_v11  ;;  %v4428_v11 = vld [vmem:[#allocation59_spill] sm:$0xff] }
  0xda   :  { %v1213_v58 = vsub.f32 %v3543_v57, %v4415_v59  ;;  %v1220_v4 = vsub.f32 %v3548_v2, %v4416_v50  ;;  %v4422_v47 = vand.u32 4294901760, %v4421_v14  ;;  %v2561_v54 = vpack.c.bf16 %v1207_v25, %v1200_v9  ;;  %v4425_v50 = vld [vmem:[#allocation58_spill] sm:$0xff]  ;;  %v4430_v14 = vld [vmem:[#allocation60_spill] sm:$0xff] }
  0xdb   :  { %v1339_v32 = vsub.f32 %v3553_v63, %v4417_v42  ;;  %v1346_v62 = vsub.f32 %v3566_v16, %v4418_v44  ;;  %2518 = vmatpush3.bf16.msra.mxu0 %v3855_v46  ;;  %2558 = vmatpush3.bf16.msra.mxu1 %v2557_v35  ;;  %v4423_v0 = vand.u32 4294901760, %v3571_v12  ;;  %v4424_v60 = vand.u32 4294901760, %v3583_v5 }
  0xdc   :  { %v3881_v24 = vpack.c.bf16 %v4422_v47, %v4420_v33  ;;  %v1214_v53 = vand.u32 4294901760, %v1213_v58  ;;  %v1221_v17 = vand.u32 4294901760, %v1220_v4  ;;  %2520 = vmatprep.subr.bf16.mxu0 %v3861_v40  ;;  %v4426_v42 = vand.u32 4294901760, %v4425_v50  ;;  %2560 = vmatprep.subr.bf16.mxu1 %v2559_v41  ;;  %v4432_v41 = vld [vmem:[#allocation62_spill] sm:$0xff] }
  0xdd   :  { %v1227_v10 = vsub.f32 %v3571_v12, %v4423_v0  ;;  %v1234_v59 = vsub.f32 %v3583_v5, %v4424_v60  ;;  %v4427_v44 = vand.u32 4294901760, %v3394_v38  ;;  %v2563_v35 = vpack.c.bf16 %v1333_v18, %v1326_v20  ;;  %v4434_v18 = vld [vmem:[#allocation63_spill] sm:$0xff] }
  0xde   :  { %v1340_v25 = vand.u32 4294901760, %v1339_v32  ;;  %v1347_v58 = vand.u32 4294901760, %v1346_v62  ;;  %v3898_v4 = vand.u32 4294901760, %v3481_v43  ;;  %v4429_v33 = vand.u32 4294901760, %v4428_v11 }
  0xdf   :  { %v3895_v9 = vpack.c.bf16 %v4427_v44, %v4426_v42  ;;  %2522 = vmatpush3.bf16.msra.mxu0 %v3881_v24  ;;  %v4431_v47 = vand.u32 4294901760, %v4430_v14  ;;  %2562 = vmatpush3.bf16.msra.mxu1 %v2561_v54  ;;  %v2565_v60 = vpack.c.bf16 %v1221_v17, %v1214_v53  ;;  %v1228_v38 = vand.u32 4294901760, %v1227_v10 }
  0xe0   :  { %v1235_v50 = vand.u32 4294901760, %v1234_v59  ;;  %v4433_v20 = vand.u32 4294901760, %v4432_v41  ;;  %v4435_v32 = vand.u32 4294901760, %v4434_v18  ;;  %2564 = vmatprep.subr.bf16.mxu1 %v2563_v35  ;;  %v2567_v42 = vpack.c.bf16 %v1347_v58, %v1340_v25  ;;  %v4438_v59 = vld [vmem:[#allocation64_spill] sm:$0xff]  ;;  %v4440_v35 = vld [vmem:[#allocation65_spill] sm:$0xff] }
  0xe1   :  { %v3905_v0 = vpack.c.bf16 %v4431_v47, %v4429_v33  ;;  %2524 = vmatprep.subr.bf16.mxu0 %v3895_v9  ;;  %v3916_v44 = vsub.f32 %v3481_v43, %v3898_v4  ;;  %v4436_v54 = vand.u32 4294901760, %v3416_v52  ;;  %v4437_v53 = vand.u32 4294901760, %v3426_v34  ;;  %v4443_v34 = vld [vmem:[#allocation66_spill] sm:$0xff] }
  0xe2   :  { %v3912_v62 = vpack.c.bf16 %v4435_v32, %v4433_v20  ;;  %v2569_v10 = vpack.c.bf16 %v1235_v50, %v1228_v38  ;;  %v4439_v11 = vand.u32 4294901760, %v4438_v59  ;;  %v4441_v25 = vand.u32 4294901760, %v4440_v35  ;;  %v4451_v32 = vld [vmem:[#allocation56_spill] sm:$0xff] }
  0xe3   :  { %2526 = vmatpush3.bf16.msra.mxu0 %v3905_v0  ;;  %v3923_v17 = vpack.c.bf16 %v4437_v53, %v4436_v54  ;;  %2566 = vmatpush3.bf16.msra.mxu1 %v2565_v60  ;;  %v1117_v43 = vand.u32 4294901760, %v3916_v44  ;;  %v4442_v52 = vand.u32 4294901760, %v3440_v30  ;;  %v4444_v33 = vand.u32 4294901760, %v4443_v34 }
  0xe4   :  { %2528 = vmatprep.subr.bf16.mxu0 %v3912_v62  ;;  %v3930_v58 = vpack.c.bf16 %v4441_v25, %v4439_v11  ;;  %2568 = vmatprep.subr.bf16.mxu1 %v2567_v42  ;;  %v4445_v47 = vand.u32 4294901760, %v3448_v56  ;;  %v4446_v60 = vand.u32 4294901760, %v3467_v55  ;;  %v4447_v30 = vand.u32 4294901760, %v3469_v49  ;;  %v4452_v42 = vld [vmem:[#allocation57_spill] sm:$0xff] }
  0xe5   :  { %v3938_v14 = vpack.c.bf16 %v4444_v33, %v4442_v52  ;;  %v1118_v50 = vsub.f32 %v3916_v44, %v1117_v43  ;;  %v4448_v41 = vand.u32 4294901760, %v3478_v31  ;;  %v2571_v55 = vpack.c.bf16 %v3312_v37, %v3298_v21  ;;  %v4450_v21 = vld [vmem:[#allocation55_spill] sm:$0xff] }
  0xe6   :  { %v3945_v38 = vpack.c.bf16 %v4446_v60, %v4445_v47  ;;  %v4449_v56 = vand.u32 4294901760, %v3755_v8  ;;  %v2573_v31 = vpack.c.bf16 %v3325_v61, %v3320_v22  ;;  %v2575_v49 = vpack.c.bf16 %v3335_v1, %v3330_v36  ;;  %v4453_v61 = vld [vmem:[#allocation61_spill] sm:$0xff] }
  0xe7   :  { %2530 = vmatpush3.bf16.msra.mxu0 %v3923_v17  ;;  %2570 = vmatpush3.bf16.msra.mxu1 %v2569_v10  ;;  %v3955_v20 = vpack.c.bf16 %v4448_v41, %v4447_v30  ;;  %v1119_v18 = vand.u32 4294901760, %v1118_v50  ;;  %v2577_v37 = vpack.c.bf16 %v4450_v21, %v3340_v7  ;;  %v2579_v54 = vpack.c.bf16 %v4452_v42, %v4451_v32  ;;  %v4454_v7 = vld [vmem:[#allocation67_spill] sm:$0xff] }
  0xe8   :  { %2532 = vmatprep.subr.bf16.mxu0 %v3930_v58  ;;  %2604 = vmatprep.subr.bf16.mxu1 %v3777_v26  ;;  %v2581_v22 = vpack.c.bf16 %v3370_v3, %v3365_v15  ;;  %v2583_v1 = vpack.c.bf16 %v3385_v13, %v3380_v29  ;;  %v2585_v36 = vpack.c.bf16 %v4453_v61, %v3390_v19  ;;  %v4456_v3 = vld [vmem:[#allocation68_spill] sm:$0xff]  ;;  %v4457_v15 = vld [vmem:[#allocation69_spill] sm:$0xff]  ;;  %v4458_v29 = vld [vmem:[#allocation70_spill] sm:$0xff] }
  0xe9   :  { %v2589_v10 = vpack.c.bf16 %v4457_v15, %v4456_v3  ;;  %v4459_v13 = vld [vmem:[#allocation71_spill] sm:$0xff]  ;;  %v2593_v19 = vpack.c.bf16 %v3522_v45, %v3511_v28  ;;  %v2595_v11 = vpack.c.bf16 %v3532_v39, %v3527_v51  ;;  %v2597_v35 = vpack.c.bf16 %v3548_v2, %v3543_v57  ;;  %v4460_v39 = vld [vmem:[#allocation24_spill] sm:$0xff]  ;;  %v4463_v51 = vld [vmem:[#allocation73_spill] sm:$0xff] }
  0xea   :  { %1352 = vmatmul.mubr.f32.vlgmr.msra.gmra.mrb[6].mxu1 %v3898_v4  ;;  %v2591_v59 = vpack.c.bf16 %v4459_v13, %v4458_v29  ;;  %v2599_v25 = vpack.c.bf16 %v3566_v16, %v3553_v63  ;;  %v2601_v28 = vpack.c.bf16 %v3583_v5, %v3571_v12  ;;  %v4461_v45 = vld [vmem:[#allocation23_spill] sm:$0xff]  ;;  %v4462_v63 = vld [vmem:[#allocation72_spill] sm:$0xff]  ;;  %v4464_v57 = vld [vmem:[#allocation74_spill] sm:$0xff] }
  0xeb   :  { %2534 = vmatpush3.bf16.msra.mxu0 %v3938_v14  ;;  %2606 = vmatpush3.bf16.msra.mxu1 %v3802_v23  ;;  %v4466_v2 = vld [vmem:[#allocation76_spill] sm:$0xff]  ;;  %v4467_v12 = vld [vmem:[#allocation77_spill] sm:$0xff]  ;;  %v4468_v5 = vld [vmem:[#allocation78_spill] sm:$0xff] }
  0xec   :  { %2536 = vmatprep.subr.bf16.mxu0 %v3945_v38  ;;  %2608 = vmatprep.subr.bf16.mxu1 %v3822_v27  ;;  %v4469_v16 = vld [vmem:[#allocation79_spill] sm:$0xff] }
  0xed   :  { %1594 = vmatprep.mubr.f32.mxu1 %v4449_v56 }
  0xef   :  { %2538 = vmatpush3.bf16.msra.mxu0 %v3955_v20  ;;  %2610 = vmatpush3.bf16.msra.mxu1 %v3828_v48 }
  0xf0   :  { %2572 = vmatprep.subr.bf16.mxu0 %v2571_v55  ;;  %2612 = vmatprep.subr.bf16.mxu1 %v3842_v6 }
  0xf2   :  { %1120 = vmatmul.mubr.f32.vlgmr.msra.gmra.mrb[6].mxu0 %v1119_v18 }
  0xf3   :  { %2574 = vmatpush3.bf16.msra.mxu0 %v2573_v31  ;;  %2614 = vmatpush3.bf16.msra.mxu1 %v3855_v46 }
  0xf4   :  { %2576 = vmatprep.subr.bf16.mxu0 %v2575_v49  ;;  %2616 = vmatprep.subr.bf16.mxu1 %v3861_v40 }
  0xf5   :  { %1487 = vmatprep.mubr.f32.mxu0 %v3755_v8  ;;  %v4455_v8 = vld [vmem:[#allocation22_spill] sm:$0xff] }
  0xf6   :  { %v2587_v53 = vpack.c.bf16 %v4455_v8, %v4454_v7 }
  0xf7   :  { %2578 = vmatpush3.bf16.msra.mxu0 %v2577_v37  ;;  %2618 = vmatpush3.bf16.msra.mxu1 %v3881_v24 }
  0xf8   :  { %2580 = vmatprep.subr.bf16.mxu0 %v2579_v54  ;;  %2620 = vmatprep.subr.bf16.mxu1 %v3895_v9 }
  0xfb   :  { %2582 = vmatpush3.bf16.msra.mxu0 %v2581_v22  ;;  %2622 = vmatpush3.bf16.msra.mxu1 %v3905_v0 }
  0xfc   :  { %2584 = vmatprep.subr.bf16.mxu0 %v2583_v1  ;;  %2624 = vmatprep.subr.bf16.mxu1 %v3912_v62 }
  0xff   :  { %2586 = vmatpush3.bf16.msra.mxu0 %v2585_v36  ;;  %2626 = vmatpush3.bf16.msra.mxu1 %v3923_v17 }
 0x100   :  { %2588 = vmatprep.subr.bf16.mxu0 %v2587_v53  ;;  %2628 = vmatprep.subr.bf16.mxu1 %v3930_v58 }
 0x103   :  { %2590 = vmatpush3.bf16.msra.mxu0 %v2589_v10  ;;  %2630 = vmatpush3.bf16.msra.mxu1 %v3938_v14 }
 0x104   :  { %2592 = vmatprep.subr.bf16.mxu0 %v2591_v59  ;;  %2632 = vmatprep.subr.bf16.mxu1 %v3945_v38 }
 0x107   :  { %2594 = vmatpush3.bf16.msra.mxu0 %v2593_v19  ;;  %2634 = vmatpush3.bf16.msra.mxu1 %v3955_v20 }
 0x108   :  { %2596 = vmatprep.subr.bf16.mxu0 %v2595_v11  ;;  %2668 = vmatprep.subr.bf16.mxu1 %v3777_v26  ;;  %v4470_v26 = vld [vmem:[#allocation80_spill] sm:$0xff] }
 0x10a   :  { %1598 = vmatmul.mubr.f32.vlgmr.msra.gmra.mrb[8].mxu1 %v1117_v43 }
 0x10b   :  { %2598 = vmatpush3.bf16.msra.mxu0 %v2597_v35  ;;  %2670 = vmatpush3.bf16.msra.mxu1 %v3802_v23  ;;  %v4471_v23 = vld [vmem:[#allocation81_spill] sm:$0xff] }
 0x10c   :  { %2600 = vmatprep.subr.bf16.mxu0 %v2599_v25  ;;  %2672 = vmatprep.subr.bf16.mxu1 %v3822_v27  ;;  %v4472_v27 = vld [vmem:[#allocation82_spill] sm:$0xff] }
 0x10d   :  { %1868 = vmatprep.mubr.f32.mxu1 %v4460_v39 }
 0x10f   :  { %2602 = vmatpush3.bf16.msra.mxu0 %v2601_v28  ;;  %2674 = vmatpush3.bf16.msra.mxu1 %v3828_v48  ;;  %v4465_v48 = vld [vmem:[#allocation75_spill] sm:$0xff] }
 0x110   :  { %2636 = vmatprep.subr.bf16.mxu0 %v4461_v45  ;;  %2676 = vmatprep.subr.bf16.mxu1 %v3842_v6  ;;  %v4473_v6 = vld [vmem:[#allocation83_spill] sm:$0xff] }
 0x112   :  { %1490 = vmatmul.mubr.f32.vlgmr.msra.gmra.mrb[8].mxu0 %v3916_v44 }
 0x113   :  { %2638 = vmatpush3.bf16.msra.mxu0 %v4462_v63  ;;  %2678 = vmatpush3.bf16.msra.mxu1 %v3855_v46  ;;  %v4474_v46 = vld [vmem:[#allocation84_spill] sm:$0xff] }
 0x114   :  { %2640 = vmatprep.subr.bf16.mxu0 %v4463_v51  ;;  %2680 = vmatprep.subr.bf16.mxu1 %v3861_v40  ;;  %v4475_v40 = vld [vmem:[#allocation85_spill] sm:$0xff] }
 0x115   :  { %1764 = vmatprep.mubr.f32.mxu0 %v4460_v39 }
 0x117   :  { %2642 = vmatpush3.bf16.msra.mxu0 %v4464_v57  ;;  %2682 = vmatpush3.bf16.msra.mxu1 %v3881_v24  ;;  %v4476_v24 = vld [vmem:[#allocation86_spill] sm:$0xff] }
 0x118   :  { %2644 = vmatprep.subr.bf16.mxu0 %v4465_v48  ;;  %2684 = vmatprep.subr.bf16.mxu1 %v3895_v9 }
 0x11b   :  { %2646 = vmatpush3.bf16.msra.mxu0 %v4466_v2  ;;  %2686 = vmatpush3.bf16.msra.mxu1 %v3905_v0 }
 0x11c   :  { %2648 = vmatprep.subr.bf16.mxu0 %v4467_v12  ;;  %2688 = vmatprep.subr.bf16.mxu1 %v3912_v62 }
 0x11f   :  { %2650 = vmatpush3.bf16.msra.mxu0 %v4468_v5  ;;  %2690 = vmatpush3.bf16.msra.mxu1 %v3923_v17 }
 0x120   :  { %2652 = vmatprep.subr.bf16.mxu0 %v4469_v16  ;;  %2692 = vmatprep.subr.bf16.mxu1 %v3930_v58 }
 0x123   :  { %2654 = vmatpush3.bf16.msra.mxu0 %v4470_v26  ;;  %2694 = vmatpush3.bf16.msra.mxu1 %v3938_v14 }
 0x124   :  { %2656 = vmatprep.subr.bf16.mxu0 %v4471_v23  ;;  %2696 = vmatprep.subr.bf16.mxu1 %v3945_v38 }
 0x127   :  { %2658 = vmatpush3.bf16.msra.mxu0 %v4472_v27  ;;  %2698 = vmatpush3.bf16.msra.mxu1 %v3955_v20 }
 0x128   :  { %2660 = vmatprep.subr.bf16.mxu0 %v4473_v6 }
 0x12a   :  { %1870 = vmatmul.mubr.f32.vlgmr.msra.gmra.mrb[10].mxu1 %v3898_v4 }
 0x12b   :  { %2662 = vmatpush3.bf16.msra.mxu0 %v4474_v46 }
 0x12c   :  { %2664 = vmatprep.subr.bf16.mxu0 %v4475_v40 }
 0x12f   :  { %2666 = vmatpush3.bf16.msra.mxu0 %v4476_v24 }
 0x132   :  { %1766 = vmatmul.mubr.f32.vlgmr.msra.gmra.mrb[10].mxu0 %v3898_v4 }
 0x159   :  { %v1962_v9 = vpop.f32.mrb[0].mxu1 }
 0x15a   :  { %v1963_v0 = vpop.f32.mrb[1].mxu1 }
 0x15b   :  { %v1964_v62 = vadd.f32 %v1963_v0, %v1962_v9 }
 0x161   :  { %v1927_v44 = vpop.f32.mrb[0].mxu0 }
 0x162   :  { %v1928_v17 = vpop.f32.mrb[1].mxu0 }
 0x163   :  { %v1929_v58 = vadd.f32 %v1928_v17, %v1927_v44 }
 0x165   :  { %v492_v43 = vadd.f32 %v1964_v62, %v1929_v58 }
 0x17c   :  { %v2032_v52 = vpop.f32.mrb[2].mxu1 }
 0x17d   :  { %v2033_v34 = vpop.f32.mrb[3].mxu1 }
 0x17e   :  { %v2034_v33 = vadd.f32 %v2033_v34, %v2032_v52 }
 0x185   :  { %v1997_v14 = vpop.f32.mrb[2].mxu0 }
 0x186   :  { %v1998_v47 = vpop.f32.mrb[3].mxu0 }
 0x187   :  { %v1999_v60 = vadd.f32 %v1998_v47, %v1997_v14 }
 0x189   :  { %v630_v38 = vadd.f32 %v1999_v60, %v492_v43 }
 0x18b   :  { %v738_v50 = vadd.f32 %v2034_v33, %v630_v38 }
 0x19d   :  { %v2102_v30 = vpop.f32.mrb[4].mxu1 }
 0x19e   :  { %v2103_v41 = vpop.f32.mrb[5].mxu1 }
 0x19f   :  { %v2104_v20 = vadd.f32 %v2103_v41, %v2102_v30 }
 0x1a5   :  { %v2067_v55 = vpop.f32.mrb[4].mxu0 }
 0x1a6   :  { %v2068_v4 = vpop.f32.mrb[5].mxu0 }
 0x1a7   :  { %v2069_v56 = vadd.f32 %v2068_v4, %v2067_v55 }
 0x1a9   :  { %v906_v18 = vadd.f32 %v2069_v56, %v738_v50 }
 0x1ab   :  { %v1010_v31 = vadd.f32 %v2104_v20, %v906_v18 }
 0x1bd   :  { %v2172_v49 = vpop.f32.mrb[6].mxu1 }
 0x1be   :  { %v2173_v21 = vpop.f32.mrb[7].mxu1 }
 0x1bf   :  { %v2174_v37 = vadd.f32 %v2173_v21, %v2172_v49 }
 0x1c5   :  { %v2137_v32 = vpop.f32.mrb[6].mxu0 }
 0x1c6   :  { %v2138_v42 = vpop.f32.mrb[7].mxu0 }
 0x1c7   :  { %v2139_v54 = vadd.f32 %v2138_v42, %v2137_v32 }
 0x1c9   :  { %v1122_v22 = vadd.f32 %v2139_v54, %v1010_v31 }
 0x1cb   :  { %v1354_v1 = vadd.f32 %v2174_v37, %v1122_v22 }
 0x1dd   :  { %v2242_v61 = vpop.f32.mrb[8].mxu1 }
 0x1de   :  { %v2243_v36 = vpop.f32.mrb[9].mxu1 }
 0x1df   :  { %v2244_v7 = vadd.f32 %v2243_v36, %v2242_v61 }
 0x1e5   :  { %v2207_v8 = vpop.f32.mrb[8].mxu0 }
 0x1e6   :  { %v2208_v53 = vpop.f32.mrb[9].mxu0 }
 0x1e7   :  { %v2209_v3 = vadd.f32 %v2208_v53, %v2207_v8 }
 0x1e9   :  { %v1492_v15 = vadd.f32 %v2209_v3, %v1354_v1 }
 0x1eb   :  { %v1600_v10 = vadd.f32 %v2244_v7, %v1492_v15 }
 0x1fd   :  { %v2312_v29 = vpop.f32.mrb[10].mxu1 }
 0x1fe   :  { %v2313_v13 = vpop.f32.mrb[11].mxu1 }
 0x1ff   :  { %v2314_v59 = vadd.f32 %v2313_v13, %v2312_v29 }
 0x205   :  { %v2277_v19 = vpop.f32.mrb[10].mxu0 }
 0x206   :  { %v2278_v11 = vpop.f32.mrb[11].mxu0 }
 0x207   :  { %v2279_v35 = vadd.f32 %v2278_v11, %v2277_v19 }
 0x209   :  { %v1768_v25 = vadd.f32 %v2279_v35, %v1600_v10 }
 0x20b   :  { %v1872_v28 = vadd.f32 %v2314_v59, %v1768_v25 }
 0x20d   :  { %1875 = vst [vmem:[#allocation9] sm:$0x3] %v1872_v28 }
 0x20e   :  { %2775 = shalt.err (!%p2772_p9)
}
 0x20f   :  { %s2776_s25 = scalar_lea.hbm %s4061_s3, 32 }
 0x210   :  { %p2777_p10 = scmp.ne.s32.totalorder %s4061_s3, %s2776_s25  ;;  %p2780_p11 = scmp.lt.u32.totalorder %s2776_s25, %s4061_s3 }
 0x212   :  { %p2782_p12 = pnand %p2780_p11, %p2777_p10 }
 0x214   :  { %2785 = shalt.err (!%p2782_p12)
}
 0x215   :  { %1885 = dma.vmem_to_hbm [thread:$0]  %s1883_s21, 32, %s4061_s3, [#allocation4]  }
 0x216   :  { %2792 = dma.done.wait [#allocation4], 32  }
 0x217   :  { %2793 = vsyncadd [#allocation4], 4294967264 }
 0x218   :  { %1889 = vsyncpa [#allocation3], 1 }
 0x219   :  { %1890 = vsyncpa [#allocation8], 1 }
 0x21a   :  { %1891 = vsyncpa [#allocation4], 1 }
 0x21b   :  { %1892 = vsyncpa [#allocation5], 1 }

</bundles_post_ra>
